<compile_context>
chip_gen: v6e
topology: v6e:2x2x1
jax: 0.10.0
libtpu: 0.0.40
codegen_flags: <defaults>
</compile_context>

<pallas_src>
import numpy as np
import jax
import jax.numpy as jnp
from jax.experimental import pallas as pl
from jax.experimental.pallas import tpu as pltpu

# ----------------------------- problem sizes ------------------------------
R = 8        # rays (after batch squeeze, B = 1)
SR = 8       # shading samples per ray
K = 4        # neighbor points per sample
N = 128      # number of neural points
EMB = 32     # embedding channels per point
NEAR = 1.0   # torch.min(near_plane) -> python float before querier call
FAR = 4.0    # torch.max(far_plane)
RADIUS = 0.6           # query radius (kernel_size * vsize analogue)
VSIZE = (0.008, 0.008, 0.008)

M = R * SR                          # total shading samples = 64
C_FEAT = 3 + EMB + 3 + 3            # xyz | embedding | color | dir = 41
LANES = 128                         # lane-dense width for all packed refs

# packed-key argmin needs N to be a power of two (low log2(N) mantissa bits
# of dist2 are replaced by the column id) and the p2 row needs N <= LANES.
assert N & (N - 1) == 0 and N <= LANES
assert M % 8 == 0


# ------------------------------ fused kernel -------------------------------
def _fused_kernel(cam_ref, feat_ref, gath_ref, aux_ref):
    cam = cam_ref[...]                           # (16, 128) packed cam block
    d_cam = cam[0:R, 0:3]                        # (R, 3) camera-frame ray dirs
    rot = cam[R:R + 3, 0:3]                      # (3, 3) cam -> world rotation
    campos = cam[R + 3:R + 4, 0:3]               # (1, 3) camera position
    p2 = cam[R + 4:R + 5, :]                     # (1, N) per-point |p|^2 row

    feat_tab = feat_ref[...]                     # (N, 128) packed feature table
    pts = feat_tab[:, 0:3]                       # (N, 3) point positions

    # world-frame unit ray dirs:  d_w = d_c @ Rot.T  (lane-axis contraction,
    # no explicit transpose of rot)
    d_world = jax.lax.dot_general(
        d_cam, rot, (((1,), (1,)), ((), ())),
        preferred_element_type=jnp.float32)      # (R, 3)
    inv_norm = jax.lax.rsqrt(
        jnp.sum(d_world * d_world, axis=-1, keepdims=True) + 1e-12)
    d_world = d_world * inv_norm

    # replicate per-sample ray dirs (row = r*SR + s) via sublane broadcasts +
    # sublane concat: no iota/compare and no MXU select push on the setup path.
    d_rep = jnp.concatenate(
        [jnp.broadcast_to(d_world[r:r + 1, :], (SR, 3)) for r in range(R)],
        axis=0)                                  # (M, 3)

    # per-sample depth, uniform in [NEAR, FAR]
    row = jax.lax.broadcasted_iota(jnp.int32, (M, 1), 0)
    s_idx = (row % SR).astype(jnp.float32)
    t_full = NEAR + (FAR - NEAR) * s_idx / float(SR - 1)     # (M, 1)

    loc_w = campos + d_rep * t_full                          # world coords
    loc_cam = jnp.dot(loc_w - campos, rot,
                      preferred_element_type=jnp.float32)    # camera coords

    # squared distance sample-loc -> every neural point.  xp contracts the
    # lane axes of both operands (== loc_w @ pts.T without materializing pts.T)
    x2 = jnp.sum(loc_w * loc_w, axis=-1, keepdims=True)      # (M, 1)
    xp = jax.lax.dot_general(
        loc_w, pts, (((1,), (1,)), ((), ())),
        preferred_element_type=jnp.float32)                  # (M, N)
    # clamp: cancellation can push dist2 slightly negative, and the packed-key
    # arg-min below requires non-negative, normal-range floats.
    dist2 = jnp.maximum(x2 + p2 - 2.0 * xp, 1e-12)           # (M, N)

    # Packed-key radius-K-NN.
    # key = fp32 whose bit pattern is (dist2 bits with the low log2(N) mantissa
    # bits zeroed) | column.  For positive normal floats bit-pattern order ==
    # float order, so a single lane-min per k yields both the (truncated)
    # minimum distance and its column; ties break toward the lowest column.
    col = jax.lax.broadcasted_iota(jnp.int32, (M, N), 1)
    hi_mask = jnp.int32(~(N - 1))
    key = pltpu.bitcast(
        (pltpu.bitcast(dist2, jnp.int32) & hi_mask) | col, jnp.float32)
    sentinel = jnp.float32(3.0e38)
    r2 = jnp.float32(RADIUS * RADIUS)

    onehots = []
    pidx_cols = []
    for _ in range(K):                                       # unrolled, K = 4
        kmin = jnp.min(key, axis=-1, keepdims=True)          # ONE XLU reduce/k
        kmin_i = pltpu.bitcast(kmin, jnp.int32)
        idx = kmin_i & jnp.int32(N - 1)                      # (M, 1) argmin col
        dmin = pltpu.bitcast(kmin_i & hi_mask, jnp.float32)  # (M, 1) min dist2
        valid = dmin <= r2
        pidx_cols.append(jnp.where(valid, idx, -1))
        # clamp-then-gather: invalid slots fetch point 0 (torch clamp(min=0)).
        safe_idx = jnp.where(valid, idx, 0)
        onehots.append((col == safe_idx).astype(jnp.float32))  # (M, N)
        key = jnp.where(col == idx, sentinel, key)           # drop chosen col

    # ONE fused gather matmul: (K*M, N) @ (N, 128) -> (K*M, 128), row = k*M+m.
    onehot_stack = jnp.concatenate(onehots, axis=0)          # (K*M, N)
    gath_ref[...] = jnp.dot(onehot_stack, feat_tab,
                            preferred_element_type=jnp.float32)

    # aux outputs via direct aligned-ish sub-slice stores (pad lanes unwritten).
    pidx_f = jnp.concatenate(pidx_cols, axis=-1).astype(jnp.float32)  # (M, K)
    aux_ref[:, 0:3] = loc_w
    aux_ref[:, 3:6] = loc_cam
    aux_ref[:, 6:9] = d_rep
    aux_ref[:, 9:9 + K] = pidx_f


def fused_query_gather(cam_blk, feat_blk):
    return pl.pallas_call(
        _fused_kernel,
        out_shape=(jax.ShapeDtypeStruct((K * M, LANES), jnp.float32),
                   jax.ShapeDtypeStruct((M, LANES), jnp.float32)),
        grid=(1,),
        in_specs=[
            pl.BlockSpec((16, LANES), lambda i: (0, 0)),
            pl.BlockSpec((N, LANES), lambda i: (0, 0)),
        ],
        out_specs=[
            pl.BlockSpec((K * M, LANES), lambda i: (0, 0)),
            pl.BlockSpec((M, LANES), lambda i: (0, 0)),
        ],
        compiler_params=pltpu.CompilerParams(
            dimension_semantics=("arbitrary",)),
    )(cam_blk, feat_blk)


# jit the packing + kernel together so the tiny packing XLA ops fuse into one
# executable and the pallas_call sees exactly two lane-dense input DMAs.
@jax.jit
def _pack_and_run(raydir, camrot, campos, pos, emb, color, pdir):
    cam_blk = jnp.zeros((16, LANES), jnp.float32)
    cam_blk = cam_blk.at[0:R, 0:3].set(raydir)
    cam_blk = cam_blk.at[R:R + 3, 0:3].set(camrot)
    cam_blk = cam_blk.at[R + 3, 0:3].set(campos)
    cam_blk = cam_blk.at[R + 4, 0:N].set(jnp.sum(pos * pos, axis=-1))

    feat_blk = jnp.zeros((N, LANES), jnp.float32)
    feat_blk = feat_blk.at[:, 0:3].set(pos)
    feat_blk = feat_blk.at[:, 3:3 + EMB].set(emb)
    feat_blk = feat_blk.at[:, 3 + EMB:6 + EMB].set(color)
    feat_blk = feat_blk.at[:, 6 + EMB:9 + EMB].set(pdir)

    return fused_query_gather(cam_blk, feat_blk)


# ----------------------------- forward glue -------------------------------
def neural_points_simple_forward(inputs):
    pts_info = inputs['points_info']
    pos = pts_info['points_position']                    # (N, 3) or (1, N, 3)
    emb = pts_info['points_embeddings']                  # (N, EMB)
    color = pts_info['points_color']                     # (N, 3)
    pdir = pts_info['points_dir']                        # (N, 3)

    raydir = inputs['raydir'][0]                         # squeeze(0) -> (R, 3)
    camrot = inputs['camrotc2w'][0]                      # (3, 3)
    campos = inputs['campos'][0]                         # (3,)

    if pos.ndim == 2:                                    # unsqueeze(0) equiv.
        pos = pos[None]
    pos2d = pos[0]                                       # (N, 3)

    # ---- single fused query + gather Pallas kernel ----
    gath, aux = _pack_and_run(
        raydir.astype(jnp.float32), camrot.astype(jnp.float32),
        campos.astype(jnp.float32), pos2d.astype(jnp.float32),
        emb.astype(jnp.float32), color.astype(jnp.float32),
        pdir.astype(jnp.float32))

    # gathered slab rows are ordered k*M + m (m = r*SR + s)
    gathered = gath[:, :C_FEAT].reshape(K, R, SR, C_FEAT)
    gathered = jnp.transpose(gathered, (1, 2, 0, 3))[None]   # (1,R,SR,K,C)
    sampled_xyz = gathered[..., :3]
    sampled_embedding = gathered[..., 3:3 + EMB]
    sampled_color = gathered[..., 3 + EMB:6 + EMB]
    sampled_dir = gathered[..., 6 + EMB:9 + EMB]

    loc_w = aux[:, 0:3].reshape(1, R, SR, 3)
    loc_cam = aux[:, 3:6].reshape(1, R, SR, 3)
    ray_dirs = aux[:, 6:9].reshape(1, R, SR, 3)
    sample_pidx = aux[:, 9:9 + K].astype(jnp.int32).reshape(1, R, SR, K)

    sample_pnt_mask = sample_pidx >= 0
    ray_mask = jnp.any(sample_pnt_mask.reshape(1, R, SR * K),
                       axis=-1).astype(jnp.int32)        # (1, R)

    return {
        'sampled_color': sampled_color,                  # (1,R,SR,K,3)
        'sampled_dir': sampled_dir,                      # (1,R,SR,K,3)
        'sampled_conf': None,                            # as in torch
        'sampled_embedding': sampled_embedding,          # (1,R,SR,K,EMB)
        'sampled_xyz': sampled_xyz,                      # (1,R,SR,K,3)
        'sampled_pnt_mask': sample_pnt_mask,             # (1,R,SR,K)
        'sample_loc_cam_coor': loc_cam,
        'sample_loc_w_coor': loc_w,
        'sample_ray_dirs': ray_dirs,
        'ray_mask_tensor': ray_mask,
        'raypos_tensor': loc_w,
        'vsize_np': np.asarray(VSIZE, dtype=np.float32),
    }


# --------------------------------- main ------------------------------------
if __name__ == "__main__":
    key = jax.random.PRNGKey(0)
    k1, k2, k3, k4, k5 = jax.random.split(key, 5)

    points_position = jax.random.uniform(k1, (N, 3), jnp.float32, -1.0, 1.0)
    points_embeddings = 0.1 * jax.random.normal(k2, (N, EMB), jnp.float32)
    points_color = jax.random.uniform(k3, (N, 3), jnp.float32, 0.0, 1.0)
    pdir_raw = jax.random.normal(k4, (N, 3), jnp.float32)
    points_dir = pdir_raw / jnp.linalg.norm(pdir_raw, axis=-1, keepdims=True)

    # camera-frame ray dirs: look roughly along +z with small jitter
    jitter = 0.15 * jax.random.normal(k5, (R, 2), jnp.float32)
    raydir_cam = jnp.concatenate([jitter, jnp.ones((R, 1), jnp.float32)], -1)
    raydir_cam = raydir_cam / jnp.linalg.norm(raydir_cam, axis=-1, keepdims=True)

    inputs = {
        'points_info': {
            'points_position': points_position,
            'points_embeddings': points_embeddings,
            'points_color': points_color,
            'points_dir': points_dir,
        },
        'raydir': raydir_cam[None],                       # (1, R, 3)
        'camrotc2w': jnp.eye(3, dtype=jnp.float32)[None], # (1, 3, 3)
        'campos': jnp.array([[0.0, 0.0, -2.5]], jnp.float32),  # (1, 3)
        'near': jnp.array([NEAR], jnp.float32),
        'far': jnp.array([FAR], jnp.float32),
        'intrinsic': jnp.eye(3, dtype=jnp.float32)[None],
    }

    out = neural_points_simple_forward(inputs)
    jax.block_until_ready([v for v in out.values() if isinstance(v, jax.Array)])
    print("KERNEL_OK")
</pallas_src>

<mosaic_0001>
module attributes {stable_mosaic.version = 11 : i64} {
  func.func @_fused_kernel(%arg0: i32, %arg1: memref<16x128xf32, #tpu.memory_space<vmem>>, %arg2: memref<128x128xf32, #tpu.memory_space<vmem>>, %arg3: memref<256x128xf32, #tpu.memory_space<vmem>>, %arg4: memref<64x128xf32, #tpu.memory_space<vmem>>) attributes {dimension_semantics = [#tpu.dimension_semantics<arbitrary>], iteration_bounds = array<i64: 1>, scalar_prefetch = 0 : i64, scratch_operands = 0 : i64, tpu.core_type = #tpu.core_type<tc>, window_params = [{pipeline_mode = #tpu.pipeline_mode<synchronous>, transform_indices = @transform_0, window_bounds = array<i64: 16, 128>}, {pipeline_mode = #tpu.pipeline_mode<synchronous>, transform_indices = @transform_1, window_bounds = array<i64: 128, 128>}, {pipeline_mode = #tpu.pipeline_mode<synchronous>, transform_indices = @transform_2, window_bounds = array<i64: 256, 128>}, {pipeline_mode = #tpu.pipeline_mode<synchronous>, transform_indices = @transform_3, window_bounds = array<i64: 64, 128>}]} {
    %c0 = arith.constant 0 : index
    %c0_0 = arith.constant 0 : index
    %0 = vector.load %arg1[%c0, %c0_0] : memref<16x128xf32, #tpu.memory_space<vmem>>, vector<16x128xf32>
    %1 = vector.extract_strided_slice %0 {offsets = [0, 0], sizes = [8, 3], strides = [1, 1]} : vector<16x128xf32> to vector<8x3xf32>
    %2 = vector.extract_strided_slice %0 {offsets = [8, 0], sizes = [3, 3], strides = [1, 1]} : vector<16x128xf32> to vector<3x3xf32>
    %3 = vector.extract_strided_slice %0 {offsets = [11, 0], sizes = [1, 3], strides = [1, 1]} : vector<16x128xf32> to vector<1x3xf32>
    %4 = vector.extract_strided_slice %0 {offsets = [12, 0], sizes = [1, 128], strides = [1, 1]} : vector<16x128xf32> to vector<1x128xf32>
    %c0_1 = arith.constant 0 : index
    %c0_2 = arith.constant 0 : index
    %5 = vector.load %arg2[%c0_1, %c0_2] : memref<128x128xf32, #tpu.memory_space<vmem>>, vector<128x128xf32>
    %6 = vector.extract_strided_slice %5 {offsets = [0, 0], sizes = [128, 3], strides = [1, 1]} : vector<128x128xf32> to vector<128x3xf32>
    %cst = arith.constant dense<0.000000e+00> : vector<8x3xf32>
    %7 = tpu.matmul %1, %2, %cst {dimension_numbers = #tpu.dot_dimension_numbers<[1], [1], [0], [0], [0, 0, 1, 0], [], []>} : vector<8x3xf32>, vector<3x3xf32>, vector<8x3xf32> -> vector<8x3xf32>
    %8 = arith.mulf %7, %7 : vector<8x3xf32>
    %cst_3 = arith.constant dense<0.000000e+00> : vector<8xf32>
    %9 = vector.multi_reduction <add>, %8, %cst_3 [1] : vector<8x3xf32> to vector<8xf32>
    %10 = vector.shape_cast %9 : vector<8xf32> to vector<8x1xf32>
    %cst_4 = arith.constant 9.99999996E-13 : f32
    %11 = vector.broadcast %cst_4 : f32 to vector<8x1xf32>
    %12 = arith.addf %10, %11 : vector<8x1xf32>
    %13 = math.rsqrt %12 : vector<8x1xf32>
    %14 = vector.broadcast %13 : vector<8x1xf32> to vector<8x3xf32>
    %15 = arith.mulf %7, %14 : vector<8x3xf32>
    %16 = vector.extract_strided_slice %15 {offsets = [0, 0], sizes = [1, 3], strides = [1, 1]} : vector<8x3xf32> to vector<1x3xf32>
    %17 = vector.shape_cast %16 : vector<1x3xf32> to vector<1x3xf32>
    %18 = vector.broadcast %17 : vector<1x3xf32> to vector<8x3xf32>
    %19 = vector.extract_strided_slice %15 {offsets = [1, 0], sizes = [1, 3], strides = [1, 1]} : vector<8x3xf32> to vector<1x3xf32>
    %20 = vector.shape_cast %19 : vector<1x3xf32> to vector<1x3xf32>
    %21 = vector.broadcast %20 : vector<1x3xf32> to vector<8x3xf32>
    %22 = vector.extract_strided_slice %15 {offsets = [2, 0], sizes = [1, 3], strides = [1, 1]} : vector<8x3xf32> to vector<1x3xf32>
    %23 = vector.shape_cast %22 : vector<1x3xf32> to vector<1x3xf32>
    %24 = vector.broadcast %23 : vector<1x3xf32> to vector<8x3xf32>
    %25 = vector.extract_strided_slice %15 {offsets = [3, 0], sizes = [1, 3], strides = [1, 1]} : vector<8x3xf32> to vector<1x3xf32>
    %26 = vector.shape_cast %25 : vector<1x3xf32> to vector<1x3xf32>
    %27 = vector.broadcast %26 : vector<1x3xf32> to vector<8x3xf32>
    %28 = vector.extract_strided_slice %15 {offsets = [4, 0], sizes = [1, 3], strides = [1, 1]} : vector<8x3xf32> to vector<1x3xf32>
    %29 = vector.shape_cast %28 : vector<1x3xf32> to vector<1x3xf32>
    %30 = vector.broadcast %29 : vector<1x3xf32> to vector<8x3xf32>
    %31 = vector.extract_strided_slice %15 {offsets = [5, 0], sizes = [1, 3], strides = [1, 1]} : vector<8x3xf32> to vector<1x3xf32>
    %32 = vector.shape_cast %31 : vector<1x3xf32> to vector<1x3xf32>
    %33 = vector.broadcast %32 : vector<1x3xf32> to vector<8x3xf32>
    %34 = vector.extract_strided_slice %15 {offsets = [6, 0], sizes = [1, 3], strides = [1, 1]} : vector<8x3xf32> to vector<1x3xf32>
    %35 = vector.shape_cast %34 : vector<1x3xf32> to vector<1x3xf32>
    %36 = vector.broadcast %35 : vector<1x3xf32> to vector<8x3xf32>
    %37 = vector.extract_strided_slice %15 {offsets = [7, 0], sizes = [1, 3], strides = [1, 1]} : vector<8x3xf32> to vector<1x3xf32>
    %38 = vector.shape_cast %37 : vector<1x3xf32> to vector<1x3xf32>
    %39 = vector.broadcast %38 : vector<1x3xf32> to vector<8x3xf32>
    %40 = tpu.concatenate %18, %21, %24, %27, %30, %33, %36, %39 in 0 : vector<8x3xf32>, vector<8x3xf32>, vector<8x3xf32>, vector<8x3xf32>, vector<8x3xf32>, vector<8x3xf32>, vector<8x3xf32>, vector<8x3xf32> -> vector<64x3xf32>
    %41 = tpu.iota {dimensions = array<i32: 0>} : vector<64x1xi32>
    %c8_i32 = arith.constant 8 : i32
    %c0_i32 = arith.constant 0 : i32
    %42 = arith.cmpi eq, %c8_i32, %c0_i32 : i32
    %c1_i32 = arith.constant 1 : i32
    %43 = arith.select %42, %c1_i32, %c8_i32 : i32
    %44 = vector.broadcast %43 : i32 to vector<64x1xi32>
    %45 = arith.remsi %41, %44 : vector<64x1xi32>
    %c0_i32_5 = arith.constant 0 : i32
    %46 = vector.broadcast %c0_i32_5 : i32 to vector<64x1xi32>
    %47 = arith.cmpi ne, %45, %46 : vector<64x1xi32>
    %c0_i32_6 = arith.constant 0 : i32
    %48 = vector.broadcast %c0_i32_6 : i32 to vector<64x1xi32>
    %49 = arith.cmpi slt, %45, %48 : vector<64x1xi32>
    %c0_i32_7 = arith.constant 0 : i32
    %50 = arith.cmpi slt, %43, %c0_i32_7 : i32
    %51 = vector.broadcast %50 : i1 to vector<64x1xi1>
    %52 = vector.broadcast %51 : vector<64x1xi1> to vector<64x1xi1>
    %53 = arith.xori %49, %52 : vector<64x1xi1>
    %54 = arith.andi %53, %47 : vector<64x1xi1>
    %55 = vector.broadcast %43 : i32 to vector<64x1xi32>
    %56 = arith.addi %45, %55 : vector<64x1xi32>
    %57 = arith.select %54, %56, %45 : vector<64x1xi1>, vector<64x1xi32>
    %58 = arith.sitofp %57 : vector<64x1xi32> to vector<64x1xf32>
    %cst_8 = arith.constant 3.000000e+00 : f32
    %59 = vector.broadcast %cst_8 : f32 to vector<64x1xf32>
    %60 = arith.mulf %59, %58 : vector<64x1xf32>
    %cst_9 = arith.constant 7.000000e+00 : f32
    %61 = vector.broadcast %cst_9 : f32 to vector<64x1xf32>
    %62 = arith.divf %60, %61 : vector<64x1xf32>
    %cst_10 = arith.constant 1.000000e+00 : f32
    %63 = vector.broadcast %cst_10 : f32 to vector<64x1xf32>
    %64 = arith.addf %63, %62 : vector<64x1xf32>
    %65 = vector.broadcast %64 : vector<64x1xf32> to vector<64x3xf32>
    %66 = arith.mulf %40, %65 : vector<64x3xf32>
    %67 = vector.broadcast %3 : vector<1x3xf32> to vector<64x3xf32>
    %68 = arith.addf %67, %66 : vector<64x3xf32>
    %69 = vector.broadcast %3 : vector<1x3xf32> to vector<64x3xf32>
    %70 = arith.subf %68, %69 : vector<64x3xf32>
    %cst_11 = arith.constant dense<0.000000e+00> : vector<64x3xf32>
    %71 = tpu.matmul %70, %2, %cst_11 {dimension_numbers = #tpu.dot_dimension_numbers<[1], [0], [0], [1], [0, 0, 1, 1], [], []>} : vector<64x3xf32>, vector<3x3xf32>, vector<64x3xf32> -> vector<64x3xf32>
    %72 = arith.mulf %68, %68 : vector<64x3xf32>
    %cst_12 = arith.constant dense<0.000000e+00> : vector<64xf32>
    %73 = vector.multi_reduction <add>, %72, %cst_12 [1] : vector<64x3xf32> to vector<64xf32>
    %74 = vector.shape_cast %73 : vector<64xf32> to vector<64x1xf32>
    %cst_13 = arith.constant dense<0.000000e+00> : vector<64x128xf32>
    %75 = tpu.matmul %68, %6, %cst_13 {dimension_numbers = #tpu.dot_dimension_numbers<[1], [1], [0], [0], [0, 0, 1, 0], [], []>} : vector<64x3xf32>, vector<128x3xf32>, vector<64x128xf32> -> vector<64x128xf32>
    %76 = vector.broadcast %74 : vector<64x1xf32> to vector<64x128xf32>
    %77 = vector.broadcast %4 : vector<1x128xf32> to vector<64x128xf32>
    %78 = arith.addf %76, %77 : vector<64x128xf32>
    %cst_14 = arith.constant 2.000000e+00 : f32
    %79 = vector.broadcast %cst_14 : f32 to vector<64x128xf32>
    %80 = arith.mulf %79, %75 : vector<64x128xf32>
    %81 = arith.subf %78, %80 : vector<64x128xf32>
    %cst_15 = arith.constant 9.99999996E-13 : f32
    %82 = vector.broadcast %cst_15 : f32 to vector<64x128xf32>
    %83 = arith.maximumf %81, %82 : vector<64x128xf32>
    %84 = tpu.iota {dimensions = array<i32: 1>} : vector<64x128xi32>
    %85 = tpu.bitcast %83 : vector<64x128xf32> -> vector<64x128xi32>
    %c-128_i32 = arith.constant -128 : i32
    %86 = vector.broadcast %c-128_i32 : i32 to vector<64x128xi32>
    %87 = arith.andi %85, %86 : vector<64x128xi32>
    %88 = arith.ori %87, %84 : vector<64x128xi32>
    %89 = tpu.bitcast %88 : vector<64x128xi32> -> vector<64x128xf32>
    %cst_16 = arith.constant dense<0x7F800000> : vector<64xf32>
    %90 = vector.multi_reduction <minimumf>, %89, %cst_16 [1] : vector<64x128xf32> to vector<64xf32>
    %91 = vector.shape_cast %90 : vector<64xf32> to vector<64x1xf32>
    %92 = tpu.bitcast %91 : vector<64x1xf32> -> vector<64x1xi32>
    %c127_i32 = arith.constant 127 : i32
    %93 = vector.broadcast %c127_i32 : i32 to vector<64x1xi32>
    %94 = arith.andi %92, %93 : vector<64x1xi32>
    %c-128_i32_17 = arith.constant -128 : i32
    %95 = vector.broadcast %c-128_i32_17 : i32 to vector<64x1xi32>
    %96 = arith.andi %92, %95 : vector<64x1xi32>
    %97 = tpu.bitcast %96 : vector<64x1xi32> -> vector<64x1xf32>
    %cst_18 = arith.constant 3.600000e-01 : f32
    %98 = vector.broadcast %cst_18 : f32 to vector<64x1xf32>
    %99 = arith.cmpf ole, %97, %98 : vector<64x1xf32>
    %c-1_i32 = arith.constant -1 : i32
    %100 = vector.broadcast %c-1_i32 : i32 to vector<64x1xi32>
    %101 = arith.select %99, %94, %100 : vector<64x1xi1>, vector<64x1xi32>
    %c0_i32_19 = arith.constant 0 : i32
    %102 = vector.broadcast %c0_i32_19 : i32 to vector<64x1xi32>
    %103 = arith.select %99, %94, %102 : vector<64x1xi1>, vector<64x1xi32>
    %104 = vector.broadcast %103 : vector<64x1xi32> to vector<64x128xi32>
    %105 = arith.cmpi eq, %84, %104 : vector<64x128xi32>
    %106 = arith.extui %105 : vector<64x128xi1> to vector<64x128xi32>
    %107 = arith.sitofp %106 : vector<64x128xi32> to vector<64x128xf32>
    %108 = vector.broadcast %94 : vector<64x1xi32> to vector<64x128xi32>
    %109 = arith.cmpi eq, %84, %108 : vector<64x128xi32>
    %cst_20 = arith.constant 3.000000e+38 : f32
    %110 = vector.broadcast %cst_20 : f32 to vector<64x128xf32>
    %111 = arith.select %109, %110, %89 : vector<64x128xi1>, vector<64x128xf32>
    %cst_21 = arith.constant dense<0x7F800000> : vector<64xf32>
    %112 = vector.multi_reduction <minimumf>, %111, %cst_21 [1] : vector<64x128xf32> to vector<64xf32>
    %113 = vector.shape_cast %112 : vector<64xf32> to vector<64x1xf32>
    %114 = tpu.bitcast %113 : vector<64x1xf32> -> vector<64x1xi32>
    %c127_i32_22 = arith.constant 127 : i32
    %115 = vector.broadcast %c127_i32_22 : i32 to vector<64x1xi32>
    %116 = arith.andi %114, %115 : vector<64x1xi32>
    %c-128_i32_23 = arith.constant -128 : i32
    %117 = vector.broadcast %c-128_i32_23 : i32 to vector<64x1xi32>
    %118 = arith.andi %114, %117 : vector<64x1xi32>
    %119 = tpu.bitcast %118 : vector<64x1xi32> -> vector<64x1xf32>
    %cst_24 = arith.constant 3.600000e-01 : f32
    %120 = vector.broadcast %cst_24 : f32 to vector<64x1xf32>
    %121 = arith.cmpf ole, %119, %120 : vector<64x1xf32>
    %c-1_i32_25 = arith.constant -1 : i32
    %122 = vector.broadcast %c-1_i32_25 : i32 to vector<64x1xi32>
    %123 = arith.select %121, %116, %122 : vector<64x1xi1>, vector<64x1xi32>
    %c0_i32_26 = arith.constant 0 : i32
    %124 = vector.broadcast %c0_i32_26 : i32 to vector<64x1xi32>
    %125 = arith.select %121, %116, %124 : vector<64x1xi1>, vector<64x1xi32>
    %126 = vector.broadcast %125 : vector<64x1xi32> to vector<64x128xi32>
    %127 = arith.cmpi eq, %84, %126 : vector<64x128xi32>
    %128 = arith.extui %127 : vector<64x128xi1> to vector<64x128xi32>
    %129 = arith.sitofp %128 : vector<64x128xi32> to vector<64x128xf32>
    %130 = vector.broadcast %116 : vector<64x1xi32> to vector<64x128xi32>
    %131 = arith.cmpi eq, %84, %130 : vector<64x128xi32>
    %cst_27 = arith.constant 3.000000e+38 : f32
    %132 = vector.broadcast %cst_27 : f32 to vector<64x128xf32>
    %133 = arith.select %131, %132, %111 : vector<64x128xi1>, vector<64x128xf32>
    %cst_28 = arith.constant dense<0x7F800000> : vector<64xf32>
    %134 = vector.multi_reduction <minimumf>, %133, %cst_28 [1] : vector<64x128xf32> to vector<64xf32>
    %135 = vector.shape_cast %134 : vector<64xf32> to vector<64x1xf32>
    %136 = tpu.bitcast %135 : vector<64x1xf32> -> vector<64x1xi32>
    %c127_i32_29 = arith.constant 127 : i32
    %137 = vector.broadcast %c127_i32_29 : i32 to vector<64x1xi32>
    %138 = arith.andi %136, %137 : vector<64x1xi32>
    %c-128_i32_30 = arith.constant -128 : i32
    %139 = vector.broadcast %c-128_i32_30 : i32 to vector<64x1xi32>
    %140 = arith.andi %136, %139 : vector<64x1xi32>
    %141 = tpu.bitcast %140 : vector<64x1xi32> -> vector<64x1xf32>
    %cst_31 = arith.constant 3.600000e-01 : f32
    %142 = vector.broadcast %cst_31 : f32 to vector<64x1xf32>
    %143 = arith.cmpf ole, %141, %142 : vector<64x1xf32>
    %c-1_i32_32 = arith.constant -1 : i32
    %144 = vector.broadcast %c-1_i32_32 : i32 to vector<64x1xi32>
    %145 = arith.select %143, %138, %144 : vector<64x1xi1>, vector<64x1xi32>
    %c0_i32_33 = arith.constant 0 : i32
    %146 = vector.broadcast %c0_i32_33 : i32 to vector<64x1xi32>
    %147 = arith.select %143, %138, %146 : vector<64x1xi1>, vector<64x1xi32>
    %148 = vector.broadcast %147 : vector<64x1xi32> to vector<64x128xi32>
    %149 = arith.cmpi eq, %84, %148 : vector<64x128xi32>
    %150 = arith.extui %149 : vector<64x128xi1> to vector<64x128xi32>
    %151 = arith.sitofp %150 : vector<64x128xi32> to vector<64x128xf32>
    %152 = vector.broadcast %138 : vector<64x1xi32> to vector<64x128xi32>
    %153 = arith.cmpi eq, %84, %152 : vector<64x128xi32>
    %cst_34 = arith.constant 3.000000e+38 : f32
    %154 = vector.broadcast %cst_34 : f32 to vector<64x128xf32>
    %155 = arith.select %153, %154, %133 : vector<64x128xi1>, vector<64x128xf32>
    %cst_35 = arith.constant dense<0x7F800000> : vector<64xf32>
    %156 = vector.multi_reduction <minimumf>, %155, %cst_35 [1] : vector<64x128xf32> to vector<64xf32>
    %157 = vector.shape_cast %156 : vector<64xf32> to vector<64x1xf32>
    %158 = tpu.bitcast %157 : vector<64x1xf32> -> vector<64x1xi32>
    %c127_i32_36 = arith.constant 127 : i32
    %159 = vector.broadcast %c127_i32_36 : i32 to vector<64x1xi32>
    %160 = arith.andi %158, %159 : vector<64x1xi32>
    %c-128_i32_37 = arith.constant -128 : i32
    %161 = vector.broadcast %c-128_i32_37 : i32 to vector<64x1xi32>
    %162 = arith.andi %158, %161 : vector<64x1xi32>
    %163 = tpu.bitcast %162 : vector<64x1xi32> -> vector<64x1xf32>
    %cst_38 = arith.constant 3.600000e-01 : f32
    %164 = vector.broadcast %cst_38 : f32 to vector<64x1xf32>
    %165 = arith.cmpf ole, %163, %164 : vector<64x1xf32>
    %c-1_i32_39 = arith.constant -1 : i32
    %166 = vector.broadcast %c-1_i32_39 : i32 to vector<64x1xi32>
    %167 = arith.select %165, %160, %166 : vector<64x1xi1>, vector<64x1xi32>
    %c0_i32_40 = arith.constant 0 : i32
    %168 = vector.broadcast %c0_i32_40 : i32 to vector<64x1xi32>
    %169 = arith.select %165, %160, %168 : vector<64x1xi1>, vector<64x1xi32>
    %170 = vector.broadcast %169 : vector<64x1xi32> to vector<64x128xi32>
    %171 = arith.cmpi eq, %84, %170 : vector<64x128xi32>
    %172 = arith.extui %171 : vector<64x128xi1> to vector<64x128xi32>
    %173 = arith.sitofp %172 : vector<64x128xi32> to vector<64x128xf32>
    %174 = tpu.concatenate %107, %129, %151, %173 in 0 : vector<64x128xf32>, vector<64x128xf32>, vector<64x128xf32>, vector<64x128xf32> -> vector<256x128xf32>
    %cst_41 = arith.constant dense<0.000000e+00> : vector<256x128xf32>
    %175 = tpu.matmul %174, %5, %cst_41 {dimension_numbers = #tpu.dot_dimension_numbers<[1], [0], [0], [1], [0, 0, 1, 1], [], []>} : vector<256x128xf32>, vector<128x128xf32>, vector<256x128xf32> -> vector<256x128xf32>
    %c0_42 = arith.constant 0 : index
    %c0_43 = arith.constant 0 : index
    %176 = vector.load %arg3[%c0_42, %c0_43] : memref<256x128xf32, #tpu.memory_space<vmem>>, vector<256x128xf32>
    tpu.vector_store %arg3[%c0_42, %c0_43], %175 {strides = array<i32>} : memref<256x128xf32, #tpu.memory_space<vmem>>, vector<256x128xf32>,
    %177 = tpu.concatenate %101, %123, %145, %167 in 1 : vector<64x1xi32>, vector<64x1xi32>, vector<64x1xi32>, vector<64x1xi32> -> vector<64x4xi32>
    %178 = arith.sitofp %177 : vector<64x4xi32> to vector<64x4xf32>
    %c0_44 = arith.constant 0 : index
    %c0_45 = arith.constant 0 : index
    %179 = vector.load %arg4[%c0_44, %c0_45] : memref<64x128xf32, #tpu.memory_space<vmem>>, vector<64x3xf32>
    tpu.vector_store %arg4[%c0_44, %c0_45], %68 {strides = array<i32>} : memref<64x128xf32, #tpu.memory_space<vmem>>, vector<64x3xf32>,
    %c0_46 = arith.constant 0 : index
    %c3 = arith.constant 3 : index
    %180 = vector.load %arg4[%c0_46, %c3] : memref<64x128xf32, #tpu.memory_space<vmem>>, vector<64x3xf32>
    tpu.vector_store %arg4[%c0_46, %c3], %71 {strides = array<i32>} : memref<64x128xf32, #tpu.memory_space<vmem>>, vector<64x3xf32>,
    %c0_47 = arith.constant 0 : index
    %c6 = arith.constant 6 : index
    %181 = vector.load %arg4[%c0_47, %c6] : memref<64x128xf32, #tpu.memory_space<vmem>>, vector<64x3xf32>
    tpu.vector_store %arg4[%c0_47, %c6], %40 {strides = array<i32>} : memref<64x128xf32, #tpu.memory_space<vmem>>, vector<64x3xf32>,
    %c0_48 = arith.constant 0 : index
    %c9 = arith.constant 9 : index
    %182 = vector.load %arg4[%c0_48, %c9] : memref<64x128xf32, #tpu.memory_space<vmem>>, vector<64x4xf32>
    tpu.vector_store %arg4[%c0_48, %c9], %178 {strides = array<i32>} : memref<64x128xf32, #tpu.memory_space<vmem>>, vector<64x4xf32>,
    return
  }
  func.func @transform_0(%arg0: i32) -> (i32, i32) {
    %c0_i32 = arith.constant 0 : i32
    %c0_i32_0 = arith.constant 0 : i32
    %c0_i32_1 = arith.constant 0 : i32
    return %c0_i32, %c0_i32_0 : i32, i32
  }
  func.func @transform_1(%arg0: i32) -> (i32, i32) {
    %c0_i32 = arith.constant 0 : i32
    %c0_i32_0 = arith.constant 0 : i32
    %c0_i32_1 = arith.constant 0 : i32
    return %c0_i32, %c0_i32_0 : i32, i32
  }
  func.func @transform_2(%arg0: i32) -> (i32, i32) {
    %c0_i32 = arith.constant 0 : i32
    %c0_i32_0 = arith.constant 0 : i32
    %c0_i32_1 = arith.constant 0 : i32
    return %c0_i32, %c0_i32_0 : i32, i32
  }
  func.func @transform_3(%arg0: i32) -> (i32, i32) {
    %c0_i32 = arith.constant 0 : i32
    %c0_i32_0 = arith.constant 0 : i32
    %c0_i32_1 = arith.constant 0 : i32
    return %c0_i32, %c0_i32_0 : i32, i32
  }
}

</mosaic_0001>

<bundles_post_ra>
// kernel: _pack_and_run.1
= control target key start
LH: loop header
LB: loop body
LE: loop exit
PB: predicated region body
PF: predicated region fallthrough
CT: control target
= control target key end

     0   :  { %9 = vsyncpa [#allocation3], 0  ;;  %vm33_vm0 = vcmask 23552   ;;  %v1993_v1 = vmov 0.0   ;;  %vm1994_vm1 = vmmov 0   ;;  %s2934_s0 = inlined_call_operand.vmem [shape: f32[16,128], index: 0, kind: input, shape index: {}]   ;;  %s2935_s1 = inlined_call_operand.vmem [shape: f32[128,128], index: 1, kind: input, shape index: {}]   ;;  %s2936_s2 = inlined_call_operand.hbm [shape: f32[256,128], index: 2, kind: output, shape index: {0}]   ;;  %s2937_s3 = inlined_call_operand.hbm [shape: f32[64,128], index: 3, kind: output, shape index: {1}]  }
   0x1   :  { %v2026_v0 = vld [vmem:[%s2934_s0 + $0x8] sm:$0xff]  ;;  %1794 = vmatprep.subr.mxu1 %v1993_v1  ;;  %1796 = vmatprep.mubr.msk.f32.mxu1 %vm1994_vm1, %v1993_v1 }
   0x2   :  { %10 = vsyncpa [#allocation5], 0  ;;  %1795 = vmatpush3.xpose.msk.msra.mxu1 %vm33_vm0, %v2026_v0  ;;  %v15_v2 = vld [vmem:[%s2934_s0] sm:$0xff]  ;;  %vm339_vm2 = vcmask 1042432   ;;  %v2044_v7 = vld [vmem:[%s2935_s1 + $0x78] sm:$0xff]  ;;  %v117_v23 = vlaneseq  ;;  %s1997_s19 = smov 6  }
   0x3   :  { %1799 = vmatprep.subr.msk.mxu1 %vm339_vm2, %v2026_v0  ;;  %1857 = vmatprep.subr.mxu0 %v2044_v7  ;;  %v2053_v8 = vld [vmem:[%s2935_s1 + $0x70] sm:$0xff]  ;;  %v2060_v9 = vld [vmem:[%s2935_s1 + $0x68] sm:$0xff]  ;;  %v2067_v10 = vld [vmem:[%s2935_s1 + $0x60] sm:$0xff]  ;;  %s1998_s20 = smov 9   ;;  %s1999_s21 = smov [#allocation4]  }
   0x4   :  { %1858 = vmatpush3.msra.mxu0 %v2044_v7  ;;  %v2074_v11 = vld [vmem:[%s2935_s1 + $0x58] sm:$0xff]  ;;  %v2081_v12 = vld [vmem:[%s2935_s1 + $0x50] sm:$0xff]  ;;  %v2088_v13 = vld [vmem:[%s2935_s1 + $0x48] sm:$0xff]  ;;  %v2156_v24 = vshrl.u32 %v117_v23, 7  ;;  %s1597_s22 = sshll.u32 %s1999_s21, 4  ;;  %s1598_s22 = int_to_ptr.vmem [resolvable:$true] %s1597_s22 }
   0x5   :  { %1797 = vmatmul.mubr.msk.f32.vlgmr.msra.gmra.mxu1 %vm33_vm0, %v15_v2  ;;  %1859 = vmatprep.subr.mxu0 %v2053_v8  ;;  %v2095_v14 = vld [vmem:[%s2935_s1 + $0x40] sm:$0xff]  ;;  %v2102_v15 = vld [vmem:[%s2935_s1 + $0x38] sm:$0xff]  ;;  %v2109_v16 = vld [vmem:[%s2935_s1 + $0x30] sm:$0xff]  ;;  %s1949_s23 = scalar_lea.vmem %s1598_s22, 1024  ;;  %p1954_p1 = scmp.lt.s32.totalorder %s1598_s22, %s1598_s22 }
   0x6   :  { %1800 = vmatpush3.msk.msra.mxu1 %vm339_vm2, %v2026_v0  ;;  %1860 = vmatpush3.msra.mxu0 %v2053_v8  ;;  %v2116_v17 = vld [vmem:[%s2935_s1 + $0x28] sm:$0xff]  ;;  %v2123_v18 = vld [vmem:[%s2935_s1 + $0x20] sm:$0xff]  ;;  %v2130_v19 = vld [vmem:[%s2935_s1 + $0x18] sm:$0xff]  ;;  %v151_v25 = vadd.s32 8, %v2156_v24  ;;  %v152_v26 = vadd.s32 16, %v2156_v24  ;;  %v153_v27 = vadd.s32 24, %v2156_v24  ;;  %p1950_p0 = scmp.ne.s32.totalorder %s1598_s22, %s1949_s23  ;;  %p1955_p2 = scmp.lt.s32.totalorder %s1949_s23, %s1949_s23 }
   0x7   :  { %1813 = vmatprep.subr.msk.mxu1 %vm33_vm0, %v2044_v7  ;;  %1861 = vmatprep.subr.mxu0 %v2060_v9  ;;  %v2137_v20 = vld [vmem:[%s2935_s1 + $0x10] sm:$0xff]  ;;  %v2144_v21 = vld [vmem:[%s2935_s1 + $0x8] sm:$0xff]  ;;  %v2151_v22 = vld [vmem:[%s2935_s1] sm:$0xff]  ;;  %v154_v28 = vadd.s32 32, %v2156_v24  ;;  %v155_v29 = vadd.s32 40, %v2156_v24  ;;  %v156_v30 = vadd.s32 48, %v2156_v24 }
   0x8   :  { %1862 = vmatpush3.msra.mxu0 %v2060_v9  ;;  %v157_v31 = vadd.s32 56, %v2156_v24  ;;  %v162_v33 = vand.u32 7, %v2156_v24  ;;  %v169_v34 = vand.u32 7, %v151_v25  ;;  %v176_v36 = vand.u32 7, %v152_v26  ;;  %s1996_s1 = smov 3   ;;  %p1956_p3 = por %p1955_p2, %p1954_p1 }
   0x9   :  { %1863 = vmatprep.subr.mxu0 %v2067_v10  ;;  %v183_v37 = vand.u32 7, %v153_v27  ;;  %v190_v38 = vand.u32 7, %v154_v28  ;;  %v197_v39 = vand.u32 7, %v155_v29  ;;  %v204_v40 = vand.u32 7, %v156_v30 }
   0xa   :  { %1864 = vmatpush3.msra.mxu0 %v2067_v10  ;;  %v211_v41 = vand.u32 7, %v157_v31  ;;  %v254_v42 = vcvt.s32.f32 %v162_v33  ;;  %v255_v43 = vcvt.s32.f32 %v169_v34  ;;  %v256_v44 = vcvt.s32.f32 %v176_v36  ;;  %p1957_p4 = pnand %p1956_p3, %p1950_p0 }
   0xb   :  { %1865 = vmatprep.subr.mxu0 %v2074_v11  ;;  %v257_v45 = vcvt.s32.f32 %v183_v37  ;;  %v258_v46 = vcvt.s32.f32 %v190_v38  ;;  %v259_v47 = vcvt.s32.f32 %v197_v39  ;;  %v260_v48 = vcvt.s32.f32 %v204_v40 }
   0xc   :  { %1866 = vmatpush3.msra.mxu0 %v2074_v11  ;;  %v261_v49 = vcvt.s32.f32 %v211_v41  ;;  %v262_v50 = vmul.f32 3.0, %v254_v42  ;;  %v263_v51 = vmul.f32 3.0, %v255_v43  ;;  %v264_v52 = vmul.f32 3.0, %v256_v44 }
   0xd   :  { %1867 = vmatprep.subr.mxu0 %v2081_v12  ;;  %v265_v53 = vmul.f32 3.0, %v257_v45  ;;  %v266_v54 = vmul.f32 3.0, %v258_v46  ;;  %v267_v55 = vmul.f32 3.0, %v259_v47  ;;  %v268_v56 = vmul.f32 3.0, %v260_v48 }
   0xe   :  { %1868 = vmatpush3.msra.mxu0 %v2081_v12  ;;  %v269_v57 = vmul.f32 3.0, %v261_v49  ;;  %v131_v58 = vsub.s32 3, %v2156_v24  ;;  %v135_v59 = vsub.s32 4, %v2156_v24  ;;  %v271_v60 = vmul.f32 0.14285715, %v262_v50 }
   0xf   :  { %1869 = vmatprep.subr.mxu0 %v2088_v13  ;;  %v272_v61 = vmul.f32 0.14285715, %v263_v51  ;;  %v273_v62 = vmul.f32 0.14285715, %v264_v52  ;;  %v274_v63 = vmul.f32 0.14285715, %v265_v53 }
  0x10   :  { %1870 = vmatpush3.msra.mxu0 %v2088_v13  ;;  %v275_v1 = vmul.f32 0.14285715, %v266_v54  ;;  %v276_v2 = vmul.f32 0.14285715, %v267_v55  ;;  %v119_v25 = vsub.s32 0, %v2156_v24  ;;  %v123_v26 = vsub.s32 1, %v2156_v24 }
  0x11   :  { %1871 = vmatprep.subr.mxu0 %v2095_v14  ;;  %v127_v27 = vsub.s32 2, %v2156_v24  ;;  %v279_v29 = vadd.f32 1.0, %v271_v60  ;;  %v139_v30 = vsub.s32 5, %v2156_v24  ;;  %v143_v31 = vsub.s32 6, %v2156_v24 }
  0x12   :  { %1872 = vmatpush3.msra.mxu0 %v2095_v14  ;;  %v280_v34 = vadd.f32 1.0, %v272_v61  ;;  %v282_v36 = vadd.f32 1.0, %v274_v63  ;;  %v283_v37 = vadd.f32 1.0, %v275_v1  ;;  %v284_v38 = vadd.f32 1.0, %v276_v2 }
  0x13   :  { %1873 = vmatprep.subr.mxu0 %v2102_v15 }
  0x14   :  { %1874 = vmatpush3.msra.mxu0 %v2102_v15 }
  0x15   :  { %1875 = vmatprep.subr.mxu0 %v2109_v16 }
  0x16   :  { %1876 = vmatpush3.msra.mxu0 %v2109_v16 }
  0x17   :  { %1877 = vmatprep.subr.mxu0 %v2116_v17 }
  0x18   :  { %1878 = vmatpush3.msra.mxu0 %v2116_v17 }
  0x19   :  { %1879 = vmatprep.subr.mxu0 %v2123_v18 }
  0x1a   :  { %1880 = vmatpush3.msra.mxu0 %v2123_v18 }
  0x1b   :  { %1881 = vmatprep.subr.mxu0 %v2130_v19 }
  0x1c   :  { %1882 = vmatpush3.msra.mxu0 %v2130_v19 }
  0x1d   :  { %1883 = vmatprep.subr.mxu0 %v2137_v20 }
  0x1e   :  { %1884 = vmatpush3.msra.mxu0 %v2137_v20 }
  0x1f   :  { %1885 = vmatprep.subr.mxu0 %v2144_v21 }
  0x20   :  { %1886 = vmatpush3.msra.mxu0 %v2144_v21 }
  0x21   :  { %1887 = vmatprep.subr.mxu0 %v2151_v22 }
  0x22   :  { %1888 = vmatpush3.msra.mxu0 %v2151_v22 }
  0xc5   :  { %v2034_v3 = vpop.f32.mrf.mxu1 }
  0xc6   :  { %v110_v4 = vmul.f32 %v2034_v3, %v2034_v3 }
  0xc7   :  { %v1798_v5 = vpop.f32.mrf.mxu1 }
  0xc8   :  { %v111_v6 = vsel %vm33_vm0, %v110_v4, 0.0  ;;  %v277_v4 = vmul.f32 0.14285715, %v268_v56  ;;  %v278_v5 = vmul.f32 0.14285715, %v269_v57 }
  0xc9   :  { %112 = vadd.xlane.f32.xlu0 %v111_v6  ;;  %v2169_v6 = vrot.slane %v2026_v0, %v131_v58 }
  0xca   :  { %v285_v39 = vadd.f32 1.0, %v277_v4  ;;  %v286_v40 = vadd.f32 1.0, %v278_v5 }
 0x152   :  { %v113_v32 = vpop.xlane.xlu0 %112 }
 0x153   :  { %v114_v35 = vadd.f32 1e-12, %v113_v32  ;;  %v147_v32 = vsub.s32 7, %v2156_v24 }
 0x155   :  { %1947 = vrsqrt.f32 %v114_v35  ;;  %v281_v35 = vadd.f32 1.0, %v273_v62 }
 0x162   :  { %v1948_v28 = vpop.eup %1947 }
 0x163   :  { %v116_v33 = vmul.f32 %v1948_v28, %v2034_v3 }
 0x165   :  { %v2178_v41 = vrot.slane %v116_v33, %v119_v25  ;;  %v2180_v42 = vrot.slane %v116_v33, %v123_v26  ;;  %v2182_v43 = vrot.slane %v116_v33, %v127_v27  ;;  %v2184_v44 = vrot.slane %v116_v33, %v131_v58 }
 0x166   :  { %v2188_v45 = vrot.slane %v116_v33, %v135_v59  ;;  %v2190_v3 = vrot.slane %v116_v33, %v139_v30  ;;  %v2192_v46 = vrot.slane %v116_v33, %v143_v31  ;;  %v2194_v47 = vrot.slane %v116_v33, %v147_v32 }
 0x167   :  { %v287_v48 = vmul.f32 %v279_v29, %v2178_v41  ;;  %v288_v49 = vmul.f32 %v280_v34, %v2180_v42  ;;  %v289_v50 = vmul.f32 %v281_v35, %v2182_v43  ;;  %v290_v51 = vmul.f32 %v282_v36, %v2184_v44 }
 0x168   :  { %v291_v52 = vmul.f32 %v283_v37, %v2188_v45  ;;  %v292_v53 = vmul.f32 %v284_v38, %v2190_v3  ;;  %v293_v54 = vmul.f32 %v285_v39, %v2192_v46  ;;  %v294_v55 = vmul.f32 %v286_v40, %v2194_v47 }
 0x169   :  { %v2205_v56 = vadd.f32 %v2169_v6, %v287_v48  ;;  %v2208_v57 = vadd.f32 %v2169_v6, %v288_v49  ;;  %v2211_v58 = vadd.f32 %v2169_v6, %v289_v50  ;;  %v2214_v60 = vadd.f32 %v2169_v6, %v290_v51 }
 0x16a   :  { %v2217_v61 = vadd.f32 %v2169_v6, %v291_v52  ;;  %v2220_v62 = vadd.f32 %v2169_v6, %v292_v53  ;;  %v2223_v63 = vadd.f32 %v2169_v6, %v293_v54  ;;  %v2226_v1 = vadd.f32 %v2169_v6, %v294_v55 }
 0x16b   :  { %v307_v2 = vsub.f32 %v2205_v56, %v2169_v6  ;;  %1449 = vst.msk [vmem:[#allocation4] sm:$0xff] %vm33_vm0, %v2205_v56  ;;  %v448_v4 = vmul.f32 %v2208_v57, %v2208_v57  ;;  %1450 = vst.msk [vmem:[#allocation4 + $0x8] sm:$0xff] %vm33_vm0, %v2208_v57  ;;  %v447_v5 = vmul.f32 %v2205_v56, %v2205_v56 }
 0x16c   :  { %v308_v25 = vsub.f32 %v2208_v57, %v2169_v6  ;;  %1451 = vst.msk [vmem:[#allocation4 + $0x10] sm:$0xff] %vm33_vm0, %v2211_v58  ;;  %1452 = vst.msk [vmem:[#allocation4 + $0x18] sm:$0xff] %vm33_vm0, %v2214_v60  ;;  %v449_v28 = vmul.f32 %v2211_v58, %v2211_v58  ;;  %v450_v29 = vmul.f32 %v2214_v60, %v2214_v60 }
 0x16d   :  { %1453 = vst.msk [vmem:[#allocation4 + $0x20] sm:$0xff] %vm33_vm0, %v2217_v61  ;;  %1454 = vst.msk [vmem:[#allocation4 + $0x28] sm:$0xff] %vm33_vm0, %v2220_v62  ;;  %1801 = vmatprep.mubr.msk.f32.mxu1 %vm33_vm0, %v307_v2  ;;  %v458_v26 = vsel %vm33_vm0, %v448_v4, 0.0  ;;  %v455_v27 = vsel %vm33_vm0, %v447_v5, 0.0  ;;  %v309_v30 = vsub.f32 %v2211_v58, %v2169_v6  ;;  %v310_v31 = vsub.f32 %v2214_v60, %v2169_v6 }
 0x16e   :  { %1455 = vst.msk [vmem:[#allocation4 + $0x30] sm:$0xff] %vm33_vm0, %v2223_v63  ;;  %1456 = vst.msk [vmem:[#allocation4 + $0x38] sm:$0xff] %vm33_vm0, %v2226_v1  ;;  %459 = vadd.xlane.f32.xlu1 %v458_v26  ;;  %456 = vadd.xlane.f32.xlu0 %v455_v27  ;;  %v461_v32 = vsel %vm33_vm0, %v449_v28, 0.0  ;;  %v464_v33 = vsel %vm33_vm0, %v450_v29, 0.0  ;;  %v451_v34 = vmul.f32 %v2217_v61, %v2217_v61 }
 0x16f   :  { %1802 = vmatmul.mubr.msk.f32.vlgmr.msra.gmra.mxu1 %vm33_vm0, %v308_v25  ;;  %v452_v35 = vmul.f32 %v2220_v62, %v2220_v62  ;;  %v312_v36 = vsub.f32 %v2220_v62, %v2169_v6  ;;  %v453_v39 = vmul.f32 %v2223_v63, %v2223_v63  ;;  %v454_v40 = vmul.f32 %v2226_v1, %v2226_v1 }
 0x170   :  { %1814 = vmatpush3.xpose.msk.msra.mxu1 %vm33_vm0, %v2044_v7  ;;  %1804 = vmatprep.mubr.msk.f32.mxu1 %vm33_vm0, %v309_v30  ;;  %v311_v7 = vsub.f32 %v2217_v61, %v2169_v6  ;;  %v467_v37 = vsel %vm33_vm0, %v451_v34, 0.0  ;;  %v314_v50 = vsub.f32 %v2226_v1, %v2169_v6 }
 0x171   :  { %1815 = vmatprep.subr.msk.mxu1 %vm33_vm0, %v2053_v8  ;;  %v470_v38 = vsel %vm33_vm0, %v452_v35, 0.0  ;;  %v473_v48 = vsel %vm33_vm0, %v453_v39, 0.0  ;;  %v476_v49 = vsel %vm33_vm0, %v454_v40, 0.0 }
 0x172   :  { %462 = vadd.xlane.f32.xlu1 %v461_v32  ;;  %465 = vadd.xlane.f32.xlu0 %v464_v33 }
 0x173   :  { %1805 = vmatmul.mubr.msk.f32.gmra.mxu1 %vm33_vm0, %v310_v31 }
 0x174   :  { %1816 = vmatpush3.xpose.msk.msra.mxu1 %vm33_vm0, %v2053_v8  ;;  %1807 = vmatprep.mubr.msk.f32.mxu1 %vm33_vm0, %v311_v7  ;;  %v313_v8 = vsub.f32 %v2223_v63, %v2169_v6 }
 0x175   :  { %1817 = vmatprep.subr.msk.mxu1 %vm33_vm0, %v2060_v9 }
 0x176   :  { %468 = vadd.xlane.f32.xlu1 %v467_v37  ;;  %471 = vadd.xlane.f32.xlu0 %v470_v38 }
 0x177   :  { %1808 = vmatmul.mubr.msk.f32.gmra.mxu1 %vm33_vm0, %v312_v36 }
 0x178   :  { %1818 = vmatpush3.xpose.msk.msra.mxu1 %vm33_vm0, %v2060_v9  ;;  %1810 = vmatprep.mubr.msk.f32.mxu1 %vm33_vm0, %v313_v8 }
 0x179   :  { %1819 = vmatprep.subr.msk.mxu1 %vm33_vm0, %v2067_v10 }
 0x17a   :  { %474 = vadd.xlane.f32.xlu1 %v473_v48  ;;  %477 = vadd.xlane.f32.xlu0 %v476_v49 }
 0x17b   :  { %1811 = vmatmul.mubr.msk.f32.gmra.mxu1 %vm33_vm0, %v314_v50 }
 0x17c   :  { %1820 = vmatpush3.xpose.msk.msra.mxu1 %vm33_vm0, %v2067_v10  ;;  %1845 = vmatprep.mubr.msk.f32.mxu1 %vm33_vm0, %v2205_v56 }
 0x17d   :  { %1821 = vmatprep.subr.msk.mxu1 %vm33_vm0, %v2074_v11 }
 0x180   :  { %1822 = vmatpush3.xpose.msk.msra.mxu1 %vm33_vm0, %v2074_v11 }
 0x181   :  { %1823 = vmatprep.subr.msk.mxu1 %vm33_vm0, %v2081_v12 }
 0x184   :  { %1824 = vmatpush3.xpose.msk.msra.mxu1 %vm33_vm0, %v2081_v12 }
 0x185   :  { %1825 = vmatprep.subr.msk.mxu1 %vm33_vm0, %v2088_v13 }
 0x188   :  { %1826 = vmatpush3.xpose.msk.msra.mxu1 %vm33_vm0, %v2088_v13 }
 0x189   :  { %1827 = vmatprep.subr.msk.mxu1 %vm33_vm0, %v2095_v14 }
 0x18c   :  { %1828 = vmatpush3.xpose.msk.msra.mxu1 %vm33_vm0, %v2095_v14 }
 0x18d   :  { %1829 = vmatprep.subr.msk.mxu1 %vm33_vm0, %v2102_v15 }
 0x190   :  { %1830 = vmatpush3.xpose.msk.msra.mxu1 %vm33_vm0, %v2102_v15 }
 0x191   :  { %1831 = vmatprep.subr.msk.mxu1 %vm33_vm0, %v2109_v16 }
 0x194   :  { %1832 = vmatpush3.xpose.msk.msra.mxu1 %vm33_vm0, %v2109_v16 }
 0x195   :  { %1833 = vmatprep.subr.msk.mxu1 %vm33_vm0, %v2116_v17 }
 0x198   :  { %1834 = vmatpush3.xpose.msk.msra.mxu1 %vm33_vm0, %v2116_v17 }
 0x199   :  { %1835 = vmatprep.subr.msk.mxu1 %vm33_vm0, %v2123_v18 }
 0x19c   :  { %1836 = vmatpush3.xpose.msk.msra.mxu1 %vm33_vm0, %v2123_v18  ;;  %v659_v18 = vrot.slane %v2026_v0, %v135_v59 }
 0x19d   :  { %1837 = vmatprep.subr.msk.mxu1 %vm33_vm0, %v2130_v19 }
 0x1a0   :  { %1838 = vmatpush3.xpose.msk.msra.mxu1 %vm33_vm0, %v2130_v19 }
 0x1a1   :  { %1839 = vmatprep.subr.msk.mxu1 %vm33_vm0, %v2137_v20 }
 0x1a4   :  { %1840 = vmatpush3.xpose.msk.msra.mxu1 %vm33_vm0, %v2137_v20 }
 0x1a5   :  { %1841 = vmatprep.subr.msk.mxu1 %vm33_vm0, %v2144_v21 }
 0x1a8   :  { %1842 = vmatpush3.xpose.msk.msra.mxu1 %vm33_vm0, %v2144_v21 }
 0x1a9   :  { %1843 = vmatprep.subr.msk.mxu1 %vm33_vm0, %v2151_v22 }
 0x1ac   :  { %1844 = vmatpush3.xpose.msk.msra.mxu1 %vm33_vm0, %v2151_v22 }
 0x1af   :  { %1846 = vmatmul.mubr.msk.f32.vlgmr.msra.gmra.mxu1 %vm33_vm0, %v2208_v57  ;;  %v2390_v57 = vand.u32 127, %v117_v23 }
 0x1b0   :  { %1848 = vmatprep.mubr.msk.f32.mxu1 %vm33_vm0, %v2211_v58 }
 0x1b3   :  { %1849 = vmatmul.mubr.msk.f32.gmra.mxu1 %vm33_vm0, %v2214_v60 }
 0x1b4   :  { %1851 = vmatprep.mubr.msk.f32.mxu1 %vm33_vm0, %v2217_v61 }
 0x1b7   :  { %1852 = vmatmul.mubr.msk.f32.gmra.mxu1 %vm33_vm0, %v2220_v62 }
 0x1b8   :  { %1854 = vmatprep.mubr.msk.f32.mxu1 %vm33_vm0, %v2223_v63 }
 0x1bb   :  { %1855 = vmatmul.mubr.msk.f32.gmra.mxu1 %vm33_vm0, %v2226_v1 }
 0x1f7   :  { %v457_v15 = vpop.xlane.xlu0 %456  ;;  %v460_v16 = vpop.xlane.xlu1 %459 }
 0x1f8   :  { %v661_v6 = vadd.f32 %v659_v18, %v460_v16  ;;  %v660_v53 = vadd.f32 %v659_v18, %v457_v15 }
 0x1fb   :  { %v466_v19 = vpop.xlane.xlu0 %465  ;;  %v463_v21 = vpop.xlane.xlu1 %462 }
 0x1fc   :  { %v663_v60 = vadd.f32 %v659_v18, %v466_v19  ;;  %v662_v62 = vadd.f32 %v659_v18, %v463_v21 }
 0x1ff   :  { %v472_v54 = vpop.xlane.xlu0 %471  ;;  %v469_v24 = vpop.xlane.xlu1 %468 }
 0x200   :  { %v665_v25 = vadd.f32 %v659_v18, %v472_v54  ;;  %v664_v31 = vadd.f32 %v659_v18, %v469_v24 }
 0x203   :  { %v478_v27 = vpop.xlane.xlu0 %477  ;;  %v475_v34 = vpop.xlane.xlu1 %474 }
 0x204   :  { %v667_v38 = vadd.f32 %v659_v18, %v478_v27  ;;  %v666_v15 = vadd.f32 %v659_v18, %v475_v34 }
 0x22f   :  { %v2370_v9 = vpop.f32.mrf.mxu1 }
 0x231   :  { %v2372_v10 = vpop.f32.mrf.mxu1 }
 0x233   :  { %v2374_v11 = vpop.f32.mrf.mxu1 }
 0x235   :  { %v2376_v12 = vpop.f32.mrf.mxu1 }
 0x237   :  { %v2378_v13 = vpop.f32.mrf.mxu1 }
 0x239   :  { %v2380_v14 = vpop.f32.mrf.mxu1 }
 0x23b   :  { %v2382_v17 = vpop.f32.mrf.mxu1 }
 0x23d   :  { %v2387_v20 = vpop.f32.mrf.mxu1 }
 0x26f   :  { %v1847_v22 = vpop.f32.mrf.mxu1 }
 0x270   :  { %v669_v51 = vmul.f32 2.0, %v1847_v22 }
 0x271   :  { %v617_v52 = vpop.f32.mrf.mxu1 }
 0x272   :  { %v677_v55 = vsub.f32 %v661_v6, %v669_v51  ;;  %v668_v56 = vmul.f32 2.0, %v617_v52 }
 0x273   :  { %v1850_v58 = vpop.f32.mrf.mxu1 }
 0x274   :  { %v685_v61 = vmax.f32 %v677_v55, 1e-12  ;;  %v676_v0 = vsub.f32 %v660_v53, %v668_v56  ;;  %v671_v59 = vmul.f32 2.0, %v1850_v58 }
 0x275   :  { %v627_v63 = vpop.f32.mrf.mxu1 }
 0x276   :  { %v684_v1 = vmax.f32 %v676_v0, 1e-12  ;;  %v679_v2 = vsub.f32 %v663_v60, %v671_v59  ;;  %v670_v4 = vmul.f32 2.0, %v627_v63  ;;  %v703_v5 = vand.u32 4294967168, %v685_v61 }
 0x277   :  { %v1853_v26 = vpop.f32.mrf.mxu1 }
 0x278   :  { %v687_v28 = vmax.f32 %v679_v2, 1e-12  ;;  %v678_v29 = vsub.f32 %v662_v62, %v670_v4  ;;  %v673_v30 = vmul.f32 2.0, %v1853_v26  ;;  %v711_v23 = vor.u32 %v703_v5, %v2390_v57 }
 0x279   :  { %v637_v32 = vpop.f32.mrf.mxu1  ;;  %v702_v33 = vand.u32 4294967168, %v684_v1 }
 0x27a   :  { %v686_v35 = vmax.f32 %v678_v29, 1e-12  ;;  %v681_v7 = vsub.f32 %v665_v25, %v673_v30  ;;  %v672_v36 = vmul.f32 2.0, %v637_v32  ;;  %728 = vmin.xlane.f32.xlu0 %v711_v23  ;;  %v705_v37 = vand.u32 4294967168, %v687_v28 }
 0x27b   :  { %v1856_v39 = vpop.f32.mrf.mxu1  ;;  %v710_v40 = vor.u32 %v702_v33, %v2390_v57 }
 0x27c   :  { %v689_v8 = vmax.f32 %v681_v7, 1e-12  ;;  %v680_v48 = vsub.f32 %v664_v31, %v672_v36  ;;  %v675_v49 = vmul.f32 2.0, %v1856_v39  ;;  %v713_v50 = vor.u32 %v705_v37, %v2390_v57 }
 0x27d   :  { %726 = vmin.xlane.f32.xlu1 %v710_v40  ;;  %v647_v16 = vpop.f32.mrf.mxu1  ;;  %v704_v19 = vand.u32 4294967168, %v686_v35 }
 0x27e   :  { %v688_v21 = vmax.f32 %v680_v48, 1e-12  ;;  %v683_v22 = vsub.f32 %v667_v38, %v675_v49  ;;  %v674_v6 = vmul.f32 2.0, %v647_v16  ;;  %732 = vmin.xlane.f32.xlu0 %v713_v50  ;;  %v707_v51 = vand.u32 4294967168, %v689_v8 }
 0x27f   :  { %v712_v52 = vor.u32 %v704_v19, %v2390_v57  ;;  %v1995_v49 = vmov 1.0  }
 0x280   :  { %v691_v53 = vmax.f32 %v683_v22, 1e-12  ;;  %v682_v54 = vsub.f32 %v666_v15, %v674_v6  ;;  %v2397_v55 = vor.u32 %v707_v51, %v2390_v57  ;;  %v706_v56 = vand.u32 4294967168, %v688_v21 }
 0x281   :  { %730 = vmin.xlane.f32.xlu1 %v712_v52 }
 0x282   :  { %v690_v58 = vmax.f32 %v682_v54, 1e-12  ;;  %736 = vmin.xlane.f32.xlu0 %v2397_v55  ;;  %v2401_v18 = vor.u32 %v706_v56, %v2390_v57  ;;  %v709_v60 = vand.u32 4294967168, %v691_v53 }
 0x284   :  { %v708_v24 = vand.u32 4294967168, %v690_v58  ;;  %v2404_v61 = vor.u32 %v709_v60, %v2390_v57 }
 0x285   :  { %734 = vmin.xlane.f32.xlu1 %v2401_v18 }
 0x286   :  { %740 = vmin.xlane.f32.xlu0 %v2404_v61  ;;  %v2409_v0 = vor.u32 %v708_v24, %v2390_v57 }
 0x289   :  { %738 = vmin.xlane.f32.xlu1 %v2409_v0 }
 0x303   :  { %v729_v59 = vpop.xlane.xlu0 %728 }
 0x304   :  { %v2412_v62 = vand.u32 127, %v729_v59  ;;  %v759_v63 = vand.u32 4294967168, %v729_v59 }
 0x306   :  { %vm2414_vm3 = vcmp.le.f32.partialorder %v759_v63, 0.36  ;;  %v727_v2 = vpop.xlane.xlu1 %726  ;;  %vm823_vm4 = vcmp.eq.s32.totalorder %v2390_v57, %v2412_v62 }
 0x307   :  { %v783_v4 = vsel %vm2414_vm3, %v2412_v62, 4294967295  ;;  %v2423_v5 = vand.u32 127, %v727_v2  ;;  %v758_v25 = vand.u32 4294967168, %v727_v2  ;;  %v733_v26 = vpop.xlane.xlu0 %732  ;;  %v2427_v29 = vsel %vm823_vm4, 3e+38, %v711_v23 }
 0x308   :  { %v2425_v27 = vand.u32 127, %v733_v26  ;;  %v761_v28 = vand.u32 4294967168, %v733_v26  ;;  %v791_v30 = vsel %vm2414_vm3, %v2412_v62, 0  ;;  %840 = vmin.xlane.f32.xlu0 %v2427_v29 }
 0x309   :  { %vm2432_vm5 = vcmp.le.f32.partialorder %v758_v25, 0.36  ;;  %vm822_vm6 = vcmp.eq.s32.totalorder %v2390_v57, %v2423_v5  ;;  %vm799_vm11 = vcmp.eq.s32.totalorder %v2390_v57, %v791_v30 }
 0x30a   :  { %v782_v32 = vsel %vm2432_vm5, %v2423_v5, 4294967295  ;;  %vm2442_vm7 = vcmp.le.f32.partialorder %v761_v28, 0.36  ;;  %v731_v33 = vpop.xlane.xlu1 %730  ;;  %v2446_v34 = vsel %vm822_vm6, 3e+38, %v710_v40  ;;  %v790_v35 = vsel %vm2432_vm5, %v2423_v5, 0 }
 0x30b   :  { %v785_v7 = vsel %vm2442_vm7, %v2425_v27, 4294967295  ;;  %v793_v36 = vsel %vm2442_vm7, %v2425_v27, 0  ;;  %v2457_v37 = vand.u32 127, %v731_v33  ;;  %v760_v38 = vand.u32 4294967168, %v731_v33  ;;  %838 = vmin.xlane.f32.xlu1 %v2446_v34  ;;  %v737_v39 = vpop.xlane.xlu0 %736 }
 0x30c   :  { %vm798_vm8 = vcmp.eq.s32.totalorder %v2390_v57, %v790_v35  ;;  %v2461_v40 = vand.u32 127, %v737_v39  ;;  %v763_v8 = vand.u32 4294967168, %v737_v39  ;;  %vm825_vm9 = vcmp.eq.s32.totalorder %v2390_v57, %v2425_v27 }
 0x30d   :  { %vm2465_vm10 = vcmp.le.f32.partialorder %v760_v38, 0.36  ;;  %1889 = vmatprep.mubr.msk.f32.mxu0 %vm798_vm8, %v1995_v49  ;;  %v2471_v15 = vsel %vm825_vm9, 3e+38, %v713_v50  ;;  %vm824_vm12 = vcmp.eq.s32.totalorder %v2390_v57, %v2457_v37  ;;  %vm801_vm14 = vcmp.eq.s32.totalorder %v2390_v57, %v793_v36 }
 0x30e   :  { %v784_v16 = vsel %vm2465_vm10, %v2457_v37, 4294967295  ;;  %v792_v19 = vsel %vm2465_vm10, %v2457_v37, 0  ;;  %vm2481_vm13 = vcmp.le.f32.partialorder %v763_v8, 0.36  ;;  %1890 = vmatmul.mubr.msk.f32.vlgmr.msra.gmra.mxu0 %vm799_vm11, %v1995_v49  ;;  %844 = vmin.xlane.f32.xlu0 %v2471_v15  ;;  %v735_v50 = vpop.xlane.xlu1 %734  ;;  %v2487_v22 = vsel %vm824_vm12, 3e+38, %v712_v52 }
 0x30f   :  { %v787_v6 = vsel %vm2481_vm13, %v2461_v40, 4294967295  ;;  %v2492_v51 = vand.u32 127, %v735_v50  ;;  %v762_v53 = vand.u32 4294967168, %v735_v50  ;;  %842 = vmin.xlane.f32.xlu1 %v2487_v22  ;;  %v741_v54 = vpop.xlane.xlu0 %740  ;;  %vm800_vm15 = vcmp.eq.s32.totalorder %v2390_v57, %v792_v19 }
 0x310   :  { %v2497_v56 = vand.u32 127, %v741_v54  ;;  %v765_v58 = vand.u32 4294967168, %v741_v54  ;;  %vm827_vm1 = vcmp.eq.s32.totalorder %v2390_v57, %v2461_v40  ;;  %v795_v52 = vsel %vm2481_vm13, %v2461_v40, 0  ;;  %1892 = vmatprep.mubr.msk.f32.mxu0 %vm800_vm15, %v1995_v49 }
 0x311   :  { %vm2504_vm2 = vcmp.le.f32.partialorder %v762_v53, 0.36  ;;  %v2510_v24 = vsel %vm827_vm1, 3e+38, %v2397_v55  ;;  %vm826_vm4 = vcmp.eq.s32.totalorder %v2390_v57, %v2492_v51  ;;  %vm803_vm12 = vcmp.eq.s32.totalorder %v2390_v57, %v795_v52 }
 0x312   :  { %v786_v59 = vsel %vm2504_vm2, %v2492_v51, 4294967295  ;;  %v794_v63 = vsel %vm2504_vm2, %v2492_v51, 0  ;;  %vm2520_vm6 = vcmp.le.f32.partialorder %v765_v58, 0.36  ;;  %1893 = vmatmul.mubr.msk.f32.gmra.mxu0 %vm801_vm14, %v1995_v49  ;;  %848 = vmin.xlane.f32.xlu0 %v2510_v24  ;;  %v739_v55 = vpop.xlane.xlu1 %738  ;;  %v2527_v25 = vsel %vm826_vm4, 3e+38, %v2401_v18 }
 0x313   :  { %v789_v26 = vsel %vm2520_vm6, %v2497_v56, 4294967295  ;;  %v2532_v28 = vand.u32 127, %v739_v55  ;;  %v764_v30 = vand.u32 4294967168, %v739_v55  ;;  %846 = vmin.xlane.f32.xlu1 %v2527_v25  ;;  %vm802_vm8 = vcmp.eq.s32.totalorder %v2390_v57, %v794_v63 }
 0x314   :  { %vm829_vm9 = vcmp.eq.s32.totalorder %v2390_v57, %v2497_v56  ;;  %1895 = vmatprep.mubr.msk.f32.mxu0 %vm802_vm8, %v1995_v49  ;;  %v797_v35 = vsel %vm2520_vm6, %v2497_v56, 0  ;;  %vm1415_vm4 = vcmask 7168  }
 0x315   :  { %vm2538_vm11 = vcmp.le.f32.partialorder %v764_v30, 0.36  ;;  %v2545_v18 = vsel %vm829_vm9, 3e+38, %v2404_v61  ;;  %vm828_vm14 = vcmp.eq.s32.totalorder %v2390_v57, %v2532_v28  ;;  %vm805_vm1 = vcmp.eq.s32.totalorder %v2390_v57, %v797_v35 }
 0x316   :  { %v788_v36 = vsel %vm2538_vm11, %v2532_v28, 4294967295  ;;  %v796_v38 = vsel %vm2538_vm11, %v2532_v28, 0  ;;  %1896 = vmatmul.mubr.msk.f32.gmra.mxu0 %vm803_vm12, %v1995_v49  ;;  %852 = vmin.xlane.f32.xlu0 %v2545_v18  ;;  %v2561_v61 = vsel %vm828_vm14, 3e+38, %v2409_v0  ;;  %vm1424_vm11 = vcmask 15360  }
 0x317   :  { %850 = vmin.xlane.f32.xlu1 %v2561_v61  ;;  %vm804_vm15 = vcmp.eq.s32.totalorder %v2390_v57, %v796_v38 }
 0x318   :  { %1898 = vmatprep.mubr.msk.f32.mxu0 %vm804_vm15, %v1995_v49 }
 0x31a   :  { %1899 = vmatmul.mubr.msk.f32.gmra.mxu0 %vm805_vm1, %v1995_v49 }
 0x391   :  { %v841_v39 = vpop.xlane.xlu0 %840 }
 0x392   :  { %v863_v8 = vand.u32 127, %v841_v39  ;;  %v871_v19 = vand.u32 4294967168, %v841_v39 }
 0x394   :  { %v839_v50 = vpop.xlane.xlu1 %838  ;;  %vm2568_vm8 = vcmp.le.f32.partialorder %v871_v19, 0.36  ;;  %vm935_vm9 = vcmp.eq.s32.totalorder %v2390_v57, %v863_v8 }
 0x395   :  { %v862_v0 = vand.u32 127, %v839_v50  ;;  %v870_v54 = vand.u32 4294967168, %v839_v50  ;;  %v895_v58 = vsel %vm2568_vm8, %v863_v8, 4294967295  ;;  %v2576_v52 = vsel %vm935_vm9, 3e+38, %v2427_v29 }
 0x396   :  { %v903_v63 = vsel %vm2568_vm8, %v863_v8, 0  ;;  %v2585_v55 = vsel %vm1415_vm4, %v783_v4, %v895_v58  ;;  %952 = vmin.xlane.f32.xlu0 %v2576_v52 }
 0x397   :  { %vm886_vm12 = vcmp.le.f32.partialorder %v870_v54, 0.36  ;;  %v845_v30 = vpop.xlane.xlu0 %844  ;;  %vm934_vm14 = vcmp.eq.s32.totalorder %v2390_v57, %v862_v0  ;;  %vm911_vm5 = vcmp.eq.s32.totalorder %v2390_v57, %v903_v63 }
 0x398   :  { %v894_v35 = vsel %vm886_vm12, %v862_v0, 4294967295  ;;  %v902_v38 = vsel %vm886_vm12, %v862_v0, 0  ;;  %v865_v29 = vand.u32 127, %v845_v30  ;;  %v873_v39 = vand.u32 4294967168, %v845_v30  ;;  %v843_v19 = vpop.xlane.xlu1 %842 }
 0x399   :  { %v2594_v62 = vsel %vm1415_vm4, %v782_v32, %v894_v35  ;;  %v864_v1 = vand.u32 127, %v843_v19  ;;  %v872_v4 = vand.u32 4294967168, %v843_v19  ;;  %v2597_v8 = vsel %vm934_vm14, 3e+38, %v2446_v34 }
 0x39a   :  { %vm2599_vm3 = vcmp.le.f32.partialorder %v873_v39, 0.36  ;;  %950 = vmin.xlane.f32.xlu1 %v2597_v8  ;;  %vm910_vm15 = vcmp.eq.s32.totalorder %v2390_v57, %v902_v38  ;;  %vm937_vm1 = vcmp.eq.s32.totalorder %v2390_v57, %v865_v29 }
 0x39b   :  { %v897_v5 = vsel %vm2599_vm3, %v865_v29, 4294967295  ;;  %v905_v31 = vsel %vm2599_vm3, %v865_v29, 0  ;;  %vm2611_vm8 = vcmp.le.f32.partialorder %v872_v4, 0.36  ;;  %v849_v34 = vpop.xlane.xlu0 %848  ;;  %1901 = vmatprep.mubr.msk.f32.mxu0 %vm910_vm15, %v1995_v49  ;;  %v2617_v53 = vsel %vm937_vm1, 3e+38, %v2471_v15 }
 0x39c   :  { %v2624_v0 = vsel %vm1415_vm4, %v785_v7, %v897_v5  ;;  %v896_v54 = vsel %vm2611_vm8, %v864_v1, 4294967295  ;;  %v904_v58 = vsel %vm2611_vm8, %v864_v1, 0  ;;  %v867_v63 = vand.u32 127, %v849_v34  ;;  %956 = vmin.xlane.f32.xlu0 %v2617_v53  ;;  %1902 = vmatmul.mubr.msk.f32.gmra.mxu0 %vm911_vm5, %v1995_v49  ;;  %v847_v15 = vpop.xlane.xlu1 %846 }
 0x39d   :  { %v2637_v27 = vsel %vm1415_vm4, %v784_v16, %v896_v54  ;;  %v875_v23 = vand.u32 4294967168, %v849_v34  ;;  %v866_v7 = vand.u32 127, %v847_v15  ;;  %v874_v30 = vand.u32 4294967168, %v847_v15 }
 0x39e   :  { %vm936_vm7 = vcmp.eq.s32.totalorder %v2390_v57, %v864_v1  ;;  %vm912_vm9 = vcmp.eq.s32.totalorder %v2390_v57, %v904_v58  ;;  %vm939_vm12 = vcmp.eq.s32.totalorder %v2390_v57, %v867_v63  ;;  %vm913_vm14 = vcmp.eq.s32.totalorder %v2390_v57, %v905_v31 }
 0x39f   :  { %vm2643_vm3 = vcmp.le.f32.partialorder %v875_v23, 0.36  ;;  %vm2647_vm15 = vcmp.le.f32.partialorder %v874_v30, 0.36  ;;  %v2652_v48 = vsel %vm936_vm7, 3e+38, %v2487_v22  ;;  %v853_v16 = vpop.xlane.xlu0 %852  ;;  %1904 = vmatprep.mubr.msk.f32.mxu0 %vm912_vm9, %v1995_v49  ;;  %vm938_vm10 = vcmp.eq.s32.totalorder %v2390_v57, %v866_v7 }
 0x3a0   :  { %v899_v38 = vsel %vm2643_vm3, %v867_v63, 4294967295  ;;  %v907_v29 = vsel %vm2643_vm3, %v867_v63, 0  ;;  %v898_v39 = vsel %vm2647_vm15, %v866_v7, 4294967295  ;;  %v906_v19 = vsel %vm2647_vm15, %v866_v7, 0  ;;  %954 = vmin.xlane.f32.xlu1 %v2652_v48  ;;  %1905 = vmatmul.mubr.msk.f32.gmra.mxu0 %vm913_vm14, %v1995_v49  ;;  %v851_v22 = vpop.xlane.xlu1 %850 }
 0x3a1   :  { %v2671_v1 = vsel %vm1415_vm4, %v787_v6, %v899_v38  ;;  %v2678_v4 = vsel %vm1415_vm4, %v786_v59, %v898_v39  ;;  %v869_v50 = vand.u32 127, %v853_v16  ;;  %v877_v5 = vand.u32 4294967168, %v853_v16 }
 0x3a2   :  { %v2683_v31 = vsel %vm939_vm12, 3e+38, %v2510_v24  ;;  %v868_v21 = vand.u32 127, %v851_v22  ;;  %v876_v32 = vand.u32 4294967168, %v851_v22  ;;  %v2686_v40 = vsel %vm938_vm10, 3e+38, %v2527_v25 }
 0x3a3   :  { %vm2688_vm13 = vcmp.le.f32.partialorder %v877_v5, 0.36  ;;  %960 = vmin.xlane.f32.xlu0 %v2683_v31  ;;  %vm914_vm2 = vcmp.eq.s32.totalorder %v2390_v57, %v906_v19  ;;  %vm941_vm1 = vcmp.eq.s32.totalorder %v2390_v57, %v869_v50  ;;  %vm915_vm5 = vcmp.eq.s32.totalorder %v2390_v57, %v907_v29 }
 0x3a4   :  { %v901_v51 = vsel %vm2688_vm13, %v869_v50, 4294967295  ;;  %v909_v60 = vsel %vm2688_vm13, %v869_v50, 0  ;;  %vm892_vm8 = vcmp.le.f32.partialorder %v876_v32, 0.36  ;;  %958 = vmin.xlane.f32.xlu1 %v2686_v40  ;;  %1907 = vmatprep.mubr.msk.f32.mxu0 %vm914_vm2, %v1995_v49  ;;  %v2703_v24 = vsel %vm941_vm1, 3e+38, %v2545_v18 }
 0x3a5   :  { %v2710_v59 = vsel %vm1415_vm4, %v789_v26, %v901_v51  ;;  %v900_v25 = vsel %vm892_vm8, %v868_v21, 4294967295  ;;  %v908_v34 = vsel %vm892_vm8, %v868_v21, 0  ;;  %1908 = vmatmul.mubr.msk.f32.gmra.mxu0 %vm915_vm5, %v1995_v49  ;;  %vm940_vm7 = vcmp.eq.s32.totalorder %v2390_v57, %v868_v21 }
 0x3a6   :  { %v2719_v18 = vsel %vm1415_vm4, %v788_v36, %v900_v25  ;;  %v2722_v2 = vsel %vm940_vm7, 3e+38, %v2561_v61  ;;  %vm916_vm6 = vcmp.eq.s32.totalorder %v2390_v57, %v908_v34  ;;  %vm917_vm9 = vcmp.eq.s32.totalorder %v2390_v57, %v909_v60 }
 0x3a7   :  { %964 = vmin.xlane.f32.xlu0 %v2703_v24  ;;  %1910 = vmatprep.mubr.msk.f32.mxu0 %vm916_vm6, %v1995_v49 }
 0x3a8   :  { %962 = vmin.xlane.f32.xlu1 %v2722_v2 }
 0x3a9   :  { %1911 = vmatmul.mubr.msk.f32.gmra.mxu0 %vm917_vm9, %v1995_v49 }
 0x3ce   :  { %v1891_v56 = vpop.f32.mrf.mxu0 }
 0x3cf   :  { %1384 = vst [vmem:[#allocation2 + $0x8] sm:$0xff] %v1891_v56 }
 0x3d0   :  { %v1224_v26 = vpop.f32.mrf.mxu0 }
 0x3d1   :  { %1383 = vst [vmem:[#allocation2] sm:$0xff] %v1224_v26 }
 0x3d2   :  { %v1894_v28 = vpop.f32.mrf.mxu0 }
 0x3d3   :  { %1386 = vst [vmem:[#allocation2 + $0x18] sm:$0xff] %v1894_v28 }
 0x3d4   :  { %v1234_v33 = vpop.f32.mrf.mxu0 }
 0x3d5   :  { %1385 = vst [vmem:[#allocation2 + $0x10] sm:$0xff] %v1234_v33 }
 0x3d6   :  { %v1897_v36 = vpop.f32.mrf.mxu0 }
 0x3d7   :  { %1388 = vst [vmem:[#allocation2 + $0x28] sm:$0xff] %v1897_v36 }
 0x3d8   :  { %v1244_v61 = vpop.f32.mrf.mxu0 }
 0x3d9   :  { %1387 = vst [vmem:[#allocation2 + $0x20] sm:$0xff] %v1244_v61 }
 0x3da   :  { %v1900_v54 = vpop.f32.mrf.mxu0 }
 0x3db   :  { %1390 = vst [vmem:[#allocation2 + $0x38] sm:$0xff] %v1900_v54 }
 0x3dc   :  { %v1254_v58 = vpop.f32.mrf.mxu0 }
 0x3dd   :  { %1389 = vst [vmem:[#allocation2 + $0x30] sm:$0xff] %v1254_v58 }
 0x41f   :  { %v953_v63 = vpop.xlane.xlu0 %952 }
 0x420   :  { %v975_v15 = vand.u32 127, %v953_v63  ;;  %v983_v23 = vand.u32 4294967168, %v953_v63 }
 0x422   :  { %vm2730_vm4 = vcmp.le.f32.partialorder %v983_v23, 0.36  ;;  %vm1047_vm12 = vcmp.eq.s32.totalorder %v2390_v57, %v975_v15 }
 0x423   :  { %v951_v30 = vpop.xlane.xlu1 %950  ;;  %v1007_v35 = vsel %vm2730_vm4, %v975_v15, 4294967295  ;;  %v1015_v38 = vsel %vm2730_vm4, %v975_v15, 0  ;;  %v1055_v19 = vsel %vm1047_vm12, 3e+38, %v2576_v52 }
 0x424   :  { %v974_v37 = vand.u32 127, %v951_v30  ;;  %v982_v16 = vand.u32 4294967168, %v951_v30  ;;  %v2741_v29 = vsel %vm1424_vm11, %v2585_v55, %v1007_v35  ;;  %1064 = vmin.xlane.f32.xlu0 %v1055_v19  ;;  %vm1023_vm2 = vcmp.eq.s32.totalorder %v2390_v57, %v1015_v38 }
 0x425   :  { %v957_v39 = vpop.xlane.xlu0 %956 }
 0x426   :  { %vm998_vm14 = vcmp.le.f32.partialorder %v982_v16, 0.36  ;;  %v977_v22 = vand.u32 127, %v957_v39  ;;  %v985_v50 = vand.u32 4294967168, %v957_v39  ;;  %vm1046_vm3 = vcmp.eq.s32.totalorder %v2390_v57, %v974_v37 }
 0x427   :  { %v1006_v5 = vsel %vm998_vm14, %v974_v37, 4294967295  ;;  %v1014_v21 = vsel %vm998_vm14, %v974_v37, 0  ;;  %v1054_v32 = vsel %vm1046_vm3, 3e+38, %v2597_v8 }
 0x428   :  { %v2748_v6 = vsel %vm1424_vm11, %v2594_v62, %v1006_v5  ;;  %vm2750_vm15 = vcmp.le.f32.partialorder %v985_v50, 0.36  ;;  %1062 = vmin.xlane.f32.xlu1 %v1054_v32  ;;  %vm1022_vm10 = vcmp.eq.s32.totalorder %v2390_v57, %v1014_v21  ;;  %vm1049_vm13 = vcmp.eq.s32.totalorder %v2390_v57, %v977_v22 }
 0x429   :  { %v1009_v52 = vsel %vm2750_vm15, %v977_v22, 4294967295  ;;  %v955_v51 = vpop.xlane.xlu1 %954  ;;  %1913 = vmatprep.mubr.msk.f32.mxu0 %vm1022_vm10, %v1995_v49  ;;  %v1057_v8 = vsel %vm1049_vm13, 3e+38, %v2617_v53  ;;  %v1017_v34 = vsel %vm2750_vm15, %v977_v22, 0 }
 0x42a   :  { %v2763_v62 = vsel %vm1424_vm11, %v2624_v0, %v1009_v52  ;;  %v976_v60 = vand.u32 127, %v955_v51  ;;  %v984_v25 = vand.u32 4294967168, %v955_v51  ;;  %1068 = vmin.xlane.f32.xlu0 %v1057_v8  ;;  %1914 = vmatmul.mubr.msk.f32.gmra.mxu0 %vm1023_vm2, %v1995_v49  ;;  %vm1025_vm9 = vcmp.eq.s32.totalorder %v2390_v57, %v1017_v34 }
 0x42c   :  { %vm1000_vm1 = vcmp.le.f32.partialorder %v984_v25, 0.36  ;;  %v961_v56 = vpop.xlane.xlu0 %960  ;;  %vm1048_vm5 = vcmp.eq.s32.totalorder %v2390_v57, %v976_v60 }
 0x42d   :  { %v1008_v26 = vsel %vm1000_vm1, %v976_v60, 4294967295  ;;  %v1016_v53 = vsel %vm1000_vm1, %v976_v60, 0  ;;  %v979_v28 = vand.u32 127, %v961_v56  ;;  %v987_v33 = vand.u32 4294967168, %v961_v56  ;;  %v959_v36 = vpop.xlane.xlu1 %958 }
 0x42e   :  { %v2771_v0 = vsel %vm1424_vm11, %v2637_v27, %v1008_v26  ;;  %v978_v61 = vand.u32 127, %v959_v36  ;;  %v986_v54 = vand.u32 4294967168, %v959_v36  ;;  %v1056_v58 = vsel %vm1048_vm5, 3e+38, %v2652_v48 }
 0x42f   :  { %vm2774_vm8 = vcmp.le.f32.partialorder %v987_v33, 0.36  ;;  %1066 = vmin.xlane.f32.xlu1 %v1056_v58  ;;  %vm1024_vm7 = vcmp.eq.s32.totalorder %v2390_v57, %v1016_v53  ;;  %vm1051_vm6 = vcmp.eq.s32.totalorder %v2390_v57, %v979_v28 }
 0x430   :  { %v1011_v15 = vsel %vm2774_vm8, %v979_v28, 4294967295  ;;  %v1019_v27 = vsel %vm2774_vm8, %v979_v28, 0  ;;  %vm2785_vm4 = vcmp.le.f32.partialorder %v986_v54, 0.36  ;;  %v965_v48 = vpop.xlane.xlu0 %964  ;;  %1916 = vmatprep.mubr.msk.f32.mxu0 %vm1024_vm7, %v1995_v49  ;;  %v1059_v7 = vsel %vm1051_vm6, 3e+38, %v2683_v31 }
 0x431   :  { %v2793_v30 = vsel %vm1424_vm11, %v2671_v1, %v1011_v15  ;;  %v1010_v35 = vsel %vm2785_vm4, %v978_v61, 4294967295  ;;  %v1018_v37 = vsel %vm2785_vm4, %v978_v61, 0  ;;  %v981_v16 = vand.u32 127, %v965_v48  ;;  %1072 = vmin.xlane.f32.xlu0 %v1059_v7  ;;  %1917 = vmatmul.mubr.msk.f32.gmra.mxu0 %vm1025_vm9, %v1995_v49  ;;  %v963_v38 = vpop.xlane.xlu1 %962 }
 0x432   :  { %v2802_v39 = vsel %vm1424_vm11, %v2678_v4, %v1010_v35  ;;  %v989_v31 = vand.u32 4294967168, %v965_v48  ;;  %v980_v19 = vand.u32 127, %v963_v38  ;;  %v988_v22 = vand.u32 4294967168, %v963_v38 }
 0x433   :  { %vm1050_vm12 = vcmp.eq.s32.totalorder %v2390_v57, %v978_v61  ;;  %vm1026_vm14 = vcmp.eq.s32.totalorder %v2390_v57, %v1018_v37  ;;  %vm1053_vm3 = vcmp.eq.s32.totalorder %v2390_v57, %v981_v16  ;;  %vm1027_vm15 = vcmp.eq.s32.totalorder %v2390_v57, %v1019_v27 }
 0x434   :  { %vm2808_vm10 = vcmp.le.f32.partialorder %v989_v31, 0.36  ;;  %vm1004_vm13 = vcmp.le.f32.partialorder %v988_v22, 0.36  ;;  %v1058_v50 = vsel %vm1050_vm12, 3e+38, %v2686_v40  ;;  %1919 = vmatprep.mubr.msk.f32.mxu0 %vm1026_vm14, %v1995_v49  ;;  %vm1052_vm2 = vcmp.eq.s32.totalorder %v2390_v57, %v980_v19 }
 0x435   :  { %v1013_v4 = vsel %vm2808_vm10, %v981_v16, 4294967295  ;;  %v1021_v5 = vsel %vm2808_vm10, %v981_v16, 0  ;;  %v1012_v21 = vsel %vm1004_vm13, %v980_v19, 4294967295  ;;  %v1020_v32 = vsel %vm1004_vm13, %v980_v19, 0  ;;  %1070 = vmin.xlane.f32.xlu1 %v1058_v50  ;;  %1920 = vmatmul.mubr.msk.f32.gmra.mxu0 %vm1027_vm15, %v1995_v49 }
 0x436   :  { %v2822_v55 = vsel %vm1424_vm11, %v2710_v59, %v1013_v4  ;;  %v2826_v40 = vsel %vm1424_vm11, %v2719_v18, %v1012_v21  ;;  %v1061_v52 = vsel %vm1053_vm3, 3e+38, %v2703_v24  ;;  %v1060_v51 = vsel %vm1052_vm2, 3e+38, %v2722_v2 }
 0x437   :  { %1076 = vmin.xlane.f32.xlu0 %v1061_v52  ;;  %vm1028_vm1 = vcmp.eq.s32.totalorder %v2390_v57, %v1020_v32  ;;  %vm1029_vm5 = vcmp.eq.s32.totalorder %v2390_v57, %v1021_v5  ;;  %vm1489_vm10 = vcmask 48152  }
 0x438   :  { %1922 = vmatprep.mubr.msk.f32.mxu0 %vm1028_vm1, %v1995_v49 }
 0x439   :  { %1074 = vmin.xlane.f32.xlu1 %v1060_v51  ;;  %1923 = vmatmul.mubr.msk.f32.gmra.mxu0 %vm1029_vm5, %v1995_v49 }
 0x44a   :  { %1465 = vrot.lane.b32.xlu1 %v2372_v10, %s1996_s1 }
 0x44d   :  { %1467 = vrot.lane.b32.xlu0 %v2370_v9, %s1996_s1 }
 0x44e   :  { %1469 = vrot.lane.b32.xlu1 %v2376_v12, %s1996_s1 }
 0x451   :  { %1475 = vrot.lane.b32.xlu0 %v2378_v13, %s1996_s1 }
 0x452   :  { %1471 = vrot.lane.b32.xlu1 %v2374_v11, %s1996_s1 }
 0x455   :  { %1479 = vrot.lane.b32.xlu0 %v2382_v17, %s1996_s1 }
 0x456   :  { %1473 = vrot.lane.b32.xlu1 %v2380_v14, %s1996_s1 }
 0x459   :  { %1508 = vrot.lane.b32.xlu0 %v2180_v42, %s1997_s19 }
 0x45a   :  { %1477 = vrot.lane.b32.xlu1 %v2387_v20, %s1996_s1 }
 0x45c   :  { %v1903_v24 = vpop.f32.mrf.mxu0 }
 0x45d   :  { %1512 = vrot.lane.b32.xlu0 %v2184_v44, %s1997_s19  ;;  %1392 = vst [vmem:[#allocation2 + $0x48] sm:$0xff] %v1903_v24 }
 0x45e   :  { %1506 = vrot.lane.b32.xlu1 %v2178_v41, %s1997_s19  ;;  %v1264_v9 = vpop.f32.mrf.mxu0 }
 0x45f   :  { %1391 = vst [vmem:[#allocation2 + $0x40] sm:$0xff] %v1264_v9 }
 0x460   :  { %v1906_v10 = vpop.f32.mrf.mxu0 }
 0x461   :  { %1516 = vrot.lane.b32.xlu0 %v2190_v3, %s1997_s19  ;;  %1394 = vst [vmem:[#allocation2 + $0x58] sm:$0xff] %v1906_v10 }
 0x462   :  { %1510 = vrot.lane.b32.xlu1 %v2182_v43, %s1997_s19  ;;  %v1274_v11 = vpop.f32.mrf.mxu0 }
 0x463   :  { %1393 = vst [vmem:[#allocation2 + $0x50] sm:$0xff] %v1274_v11 }
 0x465   :  { %1520 = vrot.lane.b32.xlu0 %v2194_v47, %s1997_s19  ;;  %v1909_v42 = vpop.f32.mrf.mxu0 }
 0x466   :  { %1514 = vrot.lane.b32.xlu1 %v2188_v45, %s1997_s19  ;;  %1396 = vst [vmem:[#allocation2 + $0x68] sm:$0xff] %v1909_v42 }
 0x467   :  { %v1284_v44 = vpop.f32.mrf.mxu0 }
 0x468   :  { %1395 = vst [vmem:[#allocation2 + $0x60] sm:$0xff] %v1284_v44 }
 0x469   :  { %v1912_v12 = vpop.f32.mrf.mxu0 }
 0x46a   :  { %1518 = vrot.lane.b32.xlu1 %v2192_v46, %s1997_s19  ;;  %1398 = vst [vmem:[#allocation2 + $0x78] sm:$0xff] %v1912_v12 }
 0x46b   :  { %v1294_v41 = vpop.f32.mrf.mxu0 }
 0x46c   :  { %1397 = vst [vmem:[#allocation2 + $0x70] sm:$0xff] %v1294_v41 }
 0x4ad   :  { %v1065_v3 = vpop.xlane.xlu0 %1064 }
 0x4ae   :  { %v1087_v13 = vand.u32 127, %v1065_v3  ;;  %v1095_v14 = vand.u32 4294967168, %v1065_v3 }
 0x4b0   :  { %vm1111_vm11 = vcmp.le.f32.partialorder %v1095_v14, 0.36 }
 0x4b1   :  { %v1063_v43 = vpop.xlane.xlu1 %1062  ;;  %v1119_v47 = vsel %vm1111_vm11, %v1087_v13, 4294967295  ;;  %v1127_v59 = vsel %vm1111_vm11, %v1087_v13, 0 }
 0x4b2   :  { %v1086_v17 = vand.u32 127, %v1063_v43  ;;  %v1094_v20 = vand.u32 4294967168, %v1063_v43  ;;  %v1434_v8 = vsel %vm33_vm0, %v2741_v29, %v1119_v47  ;;  %vm1135_vm9 = vcmp.eq.s32.totalorder %v2390_v57, %v1127_v59 }
 0x4b3   :  { %v1069_v18 = vpop.xlane.xlu0 %1068  ;;  %v1442_v25 = vcvt.s32.f32 %v1434_v8 }
 0x4b4   :  { %vm1110_vm8 = vcmp.le.f32.partialorder %v1094_v20, 0.36  ;;  %v1089_v45 = vand.u32 127, %v1069_v18  ;;  %v1097_v2 = vand.u32 4294967168, %v1069_v18 }
 0x4b5   :  { %v1118_v46 = vsel %vm1110_vm8, %v1086_v17, 4294967295  ;;  %v1126_v60 = vsel %vm1110_vm8, %v1086_v17, 0  ;;  %1549 = vrot.lane.b32.xlu0 %v1442_v25, %s1998_s20 }
 0x4b6   :  { %vm2852_vm7 = vcmp.le.f32.partialorder %v1097_v2, 0.36  ;;  %vm1134_vm6 = vcmp.eq.s32.totalorder %v2390_v57, %v1126_v60  ;;  %v1433_v56 = vsel %vm33_vm0, %v2748_v6, %v1118_v46 }
 0x4b7   :  { %v1121_v26 = vsel %vm2852_vm7, %v1089_v45, 4294967295  ;;  %1925 = vmatprep.mubr.msk.f32.mxu0 %vm1134_vm6, %v1995_v49  ;;  %v1441_v29 = vcvt.s32.f32 %v1433_v56  ;;  %v1129_v54 = vsel %vm2852_vm7, %v1089_v45, 0  ;;  %vm1571_vm7 = vcmask 105544  }
 0x4b8   :  { %v1067_v53 = vpop.xlane.xlu1 %1066  ;;  %1926 = vmatmul.mubr.msk.f32.gmra.mxu0 %vm1135_vm9, %v1995_v49  ;;  %v1436_v28 = vsel %vm33_vm0, %v2763_v62, %v1121_v26  ;;  %vm1137_vm3 = vcmp.eq.s32.totalorder %v2390_v57, %v1129_v54 }
 0x4b9   :  { %v1088_v33 = vand.u32 127, %v1067_v53  ;;  %v1096_v36 = vand.u32 4294967168, %v1067_v53  ;;  %1547 = vrot.lane.b32.xlu1 %v1441_v29, %s1998_s20  ;;  %v1444_v6 = vcvt.s32.f32 %v1436_v28 }
 0x4ba   :  { %v1073_v61 = vpop.xlane.xlu0 %1072 }
 0x4bb   :  { %vm1112_vm4 = vcmp.le.f32.partialorder %v1096_v36, 0.36  ;;  %v1091_v58 = vand.u32 127, %v1073_v61  ;;  %v1099_v63 = vand.u32 4294967168, %v1073_v61  ;;  %1553 = vrot.lane.b32.xlu0 %v1444_v6, %s1998_s20 }
 0x4bc   :  { %v1120_v15 = vsel %vm1112_vm4, %v1088_v33, 4294967295  ;;  %v1128_v27 = vsel %vm1112_vm4, %v1088_v33, 0 }
 0x4bd   :  { %vm1115_vm12 = vcmp.le.f32.partialorder %v1099_v63, 0.36  ;;  %vm1136_vm14 = vcmp.eq.s32.totalorder %v2390_v57, %v1128_v27  ;;  %v1435_v62 = vsel %vm33_vm0, %v2771_v0, %v1120_v15 }
 0x4be   :  { %v1123_v23 = vsel %vm1115_vm12, %v1091_v58, 4294967295  ;;  %v1071_v48 = vpop.xlane.xlu1 %1070  ;;  %1928 = vmatprep.mubr.msk.f32.mxu0 %vm1136_vm14, %v1995_v49  ;;  %v1443_v7 = vcvt.s32.f32 %v1435_v62  ;;  %v1131_v19 = vsel %vm1115_vm12, %v1091_v58, 0 }
 0x4bf   :  { %v1090_v35 = vand.u32 127, %v1071_v48  ;;  %v1098_v37 = vand.u32 4294967168, %v1071_v48  ;;  %1929 = vmatmul.mubr.msk.f32.gmra.mxu0 %vm1137_vm3, %v1995_v49  ;;  %v1438_v16 = vsel %vm33_vm0, %v2793_v30, %v1123_v23  ;;  %vm1139_vm1 = vcmp.eq.s32.totalorder %v2390_v57, %v1131_v19 }
 0x4c0   :  { %v1077_v38 = vpop.xlane.xlu0 %1076  ;;  %1551 = vrot.lane.b32.xlu1 %v1443_v7, %s1998_s20  ;;  %v1446_v31 = vcvt.s32.f32 %v1438_v16 }
 0x4c1   :  { %vm1114_vm15 = vcmp.le.f32.partialorder %v1098_v37, 0.36  ;;  %v1093_v0 = vand.u32 127, %v1077_v38  ;;  %v1101_v22 = vand.u32 4294967168, %v1077_v38 }
 0x4c2   :  { %v1122_v1 = vsel %vm1114_vm15, %v1090_v35, 4294967295  ;;  %v1130_v50 = vsel %vm1114_vm15, %v1090_v35, 0  ;;  %v1075_v4 = vpop.xlane.xlu1 %1074  ;;  %1557 = vrot.lane.b32.xlu0 %v1446_v31, %s1998_s20 }
 0x4c3   :  { %vm1117_vm13 = vcmp.le.f32.partialorder %v1101_v22, 0.36  ;;  %v1092_v5 = vand.u32 127, %v1075_v4  ;;  %v1100_v21 = vand.u32 4294967168, %v1075_v4  ;;  %vm1138_vm2 = vcmp.eq.s32.totalorder %v2390_v57, %v1130_v50 }
 0x4c4   :  { %v1125_v30 = vsel %vm1117_vm13, %v1093_v0, 4294967295  ;;  %v1468_v32 = vpop.permute.xlu0 %1467  ;;  %1931 = vmatprep.mubr.msk.f32.mxu0 %vm1138_vm2, %v1995_v49  ;;  %v1437_v52 = vsel %vm33_vm0, %v2802_v39, %v1122_v1  ;;  %v1133_v51 = vsel %vm1117_vm13, %v1093_v0, 0 }
 0x4c5   :  { %vm1116_vm5 = vcmp.le.f32.partialorder %v1100_v21, 0.36  ;;  %1491 = vst.msk [vmem:[#allocation4 + $0x8] sm:$0xff] %vm1489_vm10, %v1468_v32  ;;  %1932 = vmatmul.mubr.msk.f32.gmra.mxu0 %vm1139_vm1, %v1995_v49  ;;  %v1445_v24 = vcvt.s32.f32 %v1437_v52  ;;  %v1440_v9 = vsel %vm33_vm0, %v2822_v55, %v1125_v30  ;;  %vm1141_vm8 = vcmp.eq.s32.totalorder %v2390_v57, %v1133_v51 }
 0x4c6   :  { %v1124_v10 = vsel %vm1116_vm5, %v1092_v5, 4294967295  ;;  %v1132_v11 = vsel %vm1116_vm5, %v1092_v5, 0  ;;  %v1466_v42 = vpop.permute.xlu1 %1465  ;;  %v1448_v44 = vcvt.s32.f32 %v1440_v9 }
 0x4c7   :  { %1555 = vrot.lane.b32.xlu1 %v1445_v24, %s1998_s20  ;;  %1490 = vst.msk [vmem:[#allocation4] sm:$0xff] %vm1489_vm10, %v1466_v42  ;;  %vm1140_vm11 = vcmp.eq.s32.totalorder %v2390_v57, %v1132_v11  ;;  %v1439_v39 = vsel %vm33_vm0, %v2826_v40, %v1124_v10  ;;  %vm1530_vm0 = vcmask 72752  }
 0x4c8   :  { %1561 = vrot.lane.b32.xlu0 %v1448_v44, %s1998_s20  ;;  %v1476_v12 = vpop.permute.xlu0 %1475  ;;  %1934 = vmatprep.mubr.msk.f32.mxu0 %vm1140_vm11, %v1995_v49  ;;  %v1447_v55 = vcvt.s32.f32 %v1439_v39 }
 0x4c9   :  { %1495 = vst.msk [vmem:[#allocation4 + $0x28] sm:$0xff] %vm1489_vm10, %v1476_v12  ;;  %1935 = vmatmul.mubr.msk.f32.gmra.mxu0 %vm1141_vm8, %v1995_v49 }
 0x4ca   :  { %v1470_v41 = vpop.permute.xlu1 %1469 }
 0x4cb   :  { %1559 = vrot.lane.b32.xlu1 %v1447_v55, %s1998_s20  ;;  %1492 = vst.msk [vmem:[#allocation4 + $0x10] sm:$0xff] %vm1489_vm10, %v1470_v41 }
 0x4cc   :  { %v1480_v3 = vpop.permute.xlu0 %1479 }
 0x4cd   :  { %1497 = vst.msk [vmem:[#allocation4 + $0x38] sm:$0xff] %vm1489_vm10, %v1480_v3 }
 0x4ce   :  { %v1472_v40 = vpop.permute.xlu1 %1471 }
 0x4cf   :  { %1493 = vst.msk [vmem:[#allocation4 + $0x18] sm:$0xff] %vm1489_vm10, %v1472_v40 }
 0x4d0   :  { %v1509_v13 = vpop.permute.xlu0 %1508 }
 0x4d1   :  { %1532 = vst.msk [vmem:[#allocation4 + $0x8] sm:$0xff] %vm1530_vm0, %v1509_v13 }
 0x4d2   :  { %v1474_v57 = vpop.permute.xlu1 %1473 }
 0x4d3   :  { %1494 = vst.msk [vmem:[#allocation4 + $0x20] sm:$0xff] %vm1489_vm10, %v1474_v57 }
 0x4d4   :  { %v1513_v14 = vpop.permute.xlu0 %1512 }
 0x4d5   :  { %1534 = vst.msk [vmem:[#allocation4 + $0x18] sm:$0xff] %vm1530_vm0, %v1513_v14 }
 0x4d6   :  { %v1478_v49 = vpop.permute.xlu1 %1477 }
 0x4d7   :  { %1496 = vst.msk [vmem:[#allocation4 + $0x30] sm:$0xff] %vm1489_vm10, %v1478_v49 }
 0x4d8   :  { %v1517_v43 = vpop.permute.xlu0 %1516 }
 0x4d9   :  { %1536 = vst.msk [vmem:[#allocation4 + $0x28] sm:$0xff] %vm1530_vm0, %v1517_v43 }
 0x4da   :  { %v1507_v17 = vpop.permute.xlu1 %1506 }
 0x4db   :  { %1531 = vst.msk [vmem:[#allocation4] sm:$0xff] %vm1530_vm0, %v1507_v17 }
 0x4dc   :  { %v1521_v20 = vpop.permute.xlu0 %1520 }
 0x4dd   :  { %1538 = vst.msk [vmem:[#allocation4 + $0x38] sm:$0xff] %vm1530_vm0, %v1521_v20 }
 0x4de   :  { %v1511_v47 = vpop.permute.xlu1 %1510 }
 0x4df   :  { %1533 = vst.msk [vmem:[#allocation4 + $0x10] sm:$0xff] %vm1530_vm0, %v1511_v47 }
 0x4e2   :  { %v1515_v59 = vpop.permute.xlu1 %1514 }
 0x4e3   :  { %1535 = vst.msk [vmem:[#allocation4 + $0x20] sm:$0xff] %vm1530_vm0, %v1515_v59 }
 0x4e6   :  { %v1519_v18 = vpop.permute.xlu1 %1518 }
 0x4e7   :  { %1537 = vst.msk [vmem:[#allocation4 + $0x30] sm:$0xff] %vm1530_vm0, %v1519_v18 }
 0x4ea   :  { %v1915_v45 = vpop.f32.mrf.mxu0 }
 0x4eb   :  { %1400 = vst [vmem:[#allocation2 + $0x88] sm:$0xff] %v1915_v45 }
 0x4ec   :  { %v1304_v2 = vpop.f32.mrf.mxu0 }
 0x4ed   :  { %1399 = vst [vmem:[#allocation2 + $0x80] sm:$0xff] %v1304_v2 }
 0x4f1   :  { %v1918_v8 = vpop.f32.mrf.mxu0 }
 0x4f2   :  { %1402 = vst [vmem:[#allocation2 + $0x98] sm:$0xff] %v1918_v8 }
 0x4f3   :  { %v1314_v46 = vpop.f32.mrf.mxu0 }
 0x4f4   :  { %1401 = vst [vmem:[#allocation2 + $0x90] sm:$0xff] %v1314_v46 }
 0x4f5   :  { %v1921_v60 = vpop.f32.mrf.mxu0 }
 0x4f6   :  { %1404 = vst [vmem:[#allocation2 + $0xa8] sm:$0xff] %v1921_v60 }
 0x4f7   :  { %v1324_v25 = vpop.f32.mrf.mxu0 }
 0x4f8   :  { %1403 = vst [vmem:[#allocation2 + $0xa0] sm:$0xff] %v1324_v25 }
 0x4f9   :  { %v1924_v34 = vpop.f32.mrf.mxu0 }
 0x4fa   :  { %1406 = vst [vmem:[#allocation2 + $0xb8] sm:$0xff] %v1924_v34 }
 0x4fb   :  { %v1334_v56 = vpop.f32.mrf.mxu0 }
 0x4fc   :  { %1405 = vst [vmem:[#allocation2 + $0xb0] sm:$0xff] %v1334_v56 }
 0x527   :  { %v1550_v26 = vpop.permute.xlu0 %1549 }
 0x528   :  { %1573 = vst.msk [vmem:[#allocation4 + $0x8] sm:$0xff] %vm1571_vm7, %v1550_v26 }
 0x52b   :  { %v1548_v29 = vpop.permute.xlu1 %1547 }
 0x52c   :  { %1572 = vst.msk [vmem:[#allocation4] sm:$0xff] %vm1571_vm7, %v1548_v29 }
 0x52d   :  { %v1554_v53 = vpop.permute.xlu0 %1553 }
 0x52e   :  { %1575 = vst.msk [vmem:[#allocation4 + $0x18] sm:$0xff] %vm1571_vm7, %v1554_v53 }
 0x532   :  { %v1552_v28 = vpop.permute.xlu1 %1551 }
 0x533   :  { %1574 = vst.msk [vmem:[#allocation4 + $0x10] sm:$0xff] %vm1571_vm7, %v1552_v28 }
 0x534   :  { %v1558_v33 = vpop.permute.xlu0 %1557 }
 0x535   :  { %1577 = vst.msk [vmem:[#allocation4 + $0x28] sm:$0xff] %vm1571_vm7, %v1558_v33 }
 0x539   :  { %v1556_v36 = vpop.permute.xlu1 %1555 }
 0x53a   :  { %1576 = vst.msk [vmem:[#allocation4 + $0x20] sm:$0xff] %vm1571_vm7, %v1556_v36  ;;  %v1562_v6 = vpop.permute.xlu0 %1561 }
 0x53b   :  { %1579 = vst.msk [vmem:[#allocation4 + $0x38] sm:$0xff] %vm1571_vm7, %v1562_v6 }
 0x53d   :  { %v1560_v61 = vpop.permute.xlu1 %1559 }
 0x53e   :  { %1578 = vst.msk [vmem:[#allocation4 + $0x30] sm:$0xff] %vm1571_vm7, %v1560_v61 }
 0x53f   :  { %1960 = shalt.err (!%p1957_p4)
}
 0x540   :  { %s2000_s24 = smov 128   ;;  %s2001_s25 = smov 8  }
 0x541   :  { %1603 = dma.vmem_to_hbm [thread:$0]  %s1598_s22, 1024, %s2937_s3, [#allocation5], %s2000_s24, %s2000_s24, %s2001_s25  }
 0x542   :  { %s2002_s28 = smov [#allocation2]  }
 0x543   :  { %s1585_s29 = sshll.u32 %s2002_s28, 4  ;;  %s1586_s29 = int_to_ptr.vmem [resolvable:$true] %s1585_s29 }
 0x544   :  { %s1969_s3 = scalar_lea.vmem %s1586_s29, 4096  ;;  %p1974_p6 = scmp.lt.s32.totalorder %s1586_s29, %s1586_s29 }
 0x545   :  { %p1970_p5 = scmp.ne.s32.totalorder %s1586_s29, %s1969_s3  ;;  %p1975_p7 = scmp.lt.s32.totalorder %s1969_s3, %s1969_s3 }
 0x547   :  { %p1976_p8 = por %p1975_p7, %p1974_p6 }
 0x549   :  { %p1977_p9 = pnand %p1976_p8, %p1970_p5 }
 0x578   :  { %v1927_v54 = vpop.f32.mrf.mxu0 }
 0x579   :  { %1408 = vst [vmem:[#allocation2 + $0xc8] sm:$0xff] %v1927_v54 }
 0x57a   :  { %v1344_v58 = vpop.f32.mrf.mxu0 }
 0x57b   :  { %1407 = vst [vmem:[#allocation2 + $0xc0] sm:$0xff] %v1344_v58 }
 0x57f   :  { %v1930_v63 = vpop.f32.mrf.mxu0 }
 0x580   :  { %1410 = vst [vmem:[#allocation2 + $0xd8] sm:$0xff] %v1930_v63 }
 0x581   :  { %v1354_v15 = vpop.f32.mrf.mxu0 }
 0x582   :  { %1409 = vst [vmem:[#allocation2 + $0xd0] sm:$0xff] %v1354_v15 }
 0x585   :  { %v1933_v27 = vpop.f32.mrf.mxu0 }
 0x586   :  { %1412 = vst [vmem:[#allocation2 + $0xe8] sm:$0xff] %v1933_v27 }
 0x587   :  { %v1364_v62 = vpop.f32.mrf.mxu0 }
 0x588   :  { %1411 = vst [vmem:[#allocation2 + $0xe0] sm:$0xff] %v1364_v62 }
 0x589   :  { %v1936_v23 = vpop.f32.mrf.mxu0 }
 0x58a   :  { %1414 = vst [vmem:[#allocation2 + $0xf8] sm:$0xff] %v1936_v23 }
 0x58b   :  { %v1374_v48 = vpop.f32.mrf.mxu0 }
 0x58c   :  { %1413 = vst [vmem:[#allocation2 + $0xf0] sm:$0xff] %v1374_v48 }
 0x58d   :  { %1980 = shalt.err (!%p1977_p9)
}
 0x58e   :  { %1591 = dma.vmem_to_hbm [thread:$0]  %s1586_s29, 4096, %s2936_s2, [#allocation3], %s2000_s24, %s2000_s24, %s2001_s25  }
 0x58f   :  { %1989 = dma.done.wait [#allocation3], 4096  }
 0x590   :  { %1990 = vsyncadd [#allocation3], 4294963200 }
 0x591   :  { %1991 = dma.done.wait [#allocation5], 1024  }
 0x592   :  { %1992 = vsyncadd [#allocation5], 4294966272 }
 0x593   :  { %1610 = vsyncpa [#allocation3], 1 }
 0x594   :  { %1611 = vsyncpa [#allocation5], 1 }

</bundles_post_ra>
